<compile_context>
chip_gen: v7x
topology: tpu7x:2x2x1
jax: 0.10.0
libtpu: 0.0.40
codegen_flags: <defaults>
</compile_context>

<pallas_src>
import math

import jax
import jax.numpy as jnp
from jax.experimental import pallas as pl
from jax.experimental.pallas import tpu as pltpu

# ---- model hyperparameters (small but structurally faithful to the module) ----
N_LAYERS = 2       # N
D_MODEL  = 32      # d_model
D_FF     = 64      # d_ff
N_HEADS  = 4       # h
D_K      = D_MODEL // N_HEADS
EPS      = 1e-6

MXU_DTYPE = jnp.bfloat16   # MXU operand dtype (v6e/v7x bf16 path); accumulation is f32

# tiling targets: >=128 rows per block for MXU M-dim utilization, capped for v7x VMEM
ROW_TARGET = 128
ROW_CAP    = 1024

# packed small-param row layout: per layer 6 rows of width D, then 2 final-LN rows
_ROWS_PER_LAYER = 6
_R_LN1A, _R_LN1B, _R_LN2A, _R_LN2B, _R_BO, _R_B2 = range(_ROWS_PER_LAYER)


# ------------------------------- math helpers ---------------------------------
def _layer_norm(x, a, b):
    # Matches the module's custom LayerNorm exactly: mean over last dim,
    # *unbiased* std (n-1 divisor, like torch.Tensor.std), and (std + eps).
    mean = jnp.mean(x, axis=-1, keepdims=True)
    diff = x - mean
    var = jnp.sum(diff * diff, axis=-1, keepdims=True) * (1.0 / (x.shape[-1] - 1))
    inv = pl.reciprocal(jnp.sqrt(var) + EPS, approx=True)   # EUP, not a VALU divide
    return a * (diff * inv) + b


def _softmax_last(s):
    s = s - jnp.max(s, axis=-1, keepdims=True)
    e = jnp.exp(s)
    return e * pl.reciprocal(jnp.sum(e, axis=-1, keepdims=True), approx=True)


def _heads_to_batch(mat, base, tb, seq):
    # mat: (tb*seq, >=base+D_MODEL) with head h in lanes [base+h*D_K, base+(h+1)*D_K)
    # -> (N_HEADS*tb, seq, D_K), head-major along the leading (batch) axis.
    return jnp.concatenate(
        [mat[:, base + h * D_K: base + (h + 1) * D_K].reshape(tb, seq, D_K)
         for h in range(N_HEADS)], axis=0)


# ------------------------------- Pallas kernel ---------------------------------
def encoder_stack_kernel(x_ref, wqkv_ref, bqkv_ref, wo_ref, w1_ref, b1_ref,
                         w2_ref, lnb_ref, o_ref):
    """Whole encoder stack (N layers + final LayerNorm) for one batch tile."""
    f32 = jnp.float32
    tb, seq, d = x_ref.shape
    m = tb * seq
    x = x_ref[...].astype(f32).reshape(m, d)        # (m, D), resident in VMEM/vregs
    scale = 1.0 / math.sqrt(D_K)

    def row(r):                                     # packed small params, (1, D)
        return lnb_ref[r:r + 1, :]

    for layer in range(N_LAYERS):                   # statically unrolled
        r0 = layer * _ROWS_PER_LAYER

        # ---- sublayer 0: x + MHA(LN(x)) ----
        y = _layer_norm(x, row(r0 + _R_LN1A), row(r0 + _R_LN1B))

        # ONE fused QKV projection per layer (96-lane-wide output, f32 accumulation)
        qkv = jnp.dot(y.astype(MXU_DTYPE), wqkv_ref[layer],
                      preferred_element_type=f32) + bqkv_ref[layer]      # (m, 3D)

        q = _heads_to_batch(qkv, 0 * D_MODEL, tb, seq)                   # (H*tb, S, dk)
        k = _heads_to_batch(qkv, 1 * D_MODEL, tb, seq)
        v = _heads_to_batch(qkv, 2 * D_MODEL, tb, seq)

        # batched attention over the merged (head*batch) axis
        s = jnp.einsum('gsd,gtd->gst', q.astype(MXU_DTYPE), k.astype(MXU_DTYPE),
                       preferred_element_type=f32) * scale               # (H*tb, S, S)
        p = _softmax_last(s)
        ctx = jnp.einsum('gst,gtd->gsd', p.astype(MXU_DTYPE), v.astype(MXU_DTYPE),
                         preferred_element_type=f32)                     # (H*tb, S, dk)

        # output projection with head concat folded into the contraction:
        # per-head (m, dk) @ (dk, D), then cheap leading-axis sum over heads.
        ctxh = ctx.reshape(N_HEADS, m, D_K).astype(MXU_DTYPE)
        per_head = jnp.einsum('hnk,hkd->hnd', ctxh, wo_ref[layer],
                              preferred_element_type=f32)                # (H, m, D)
        attn = jnp.sum(per_head, axis=0) + row(r0 + _R_BO)
        x = x + attn                                # residual (dropout = identity)

        # ---- sublayer 1: x + FFN(LN(x)) ----
        y2 = _layer_norm(x, row(r0 + _R_LN2A), row(r0 + _R_LN2B))
        h1 = jnp.dot(y2.astype(MXU_DTYPE), w1_ref[layer],
                     preferred_element_type=f32) + b1_ref[layer]
        h1 = jnp.maximum(h1, 0.0)                   # ReLU
        ff = jnp.dot(h1.astype(MXU_DTYPE), w2_ref[layer],
                     preferred_element_type=f32) + row(r0 + _R_B2)
        x = x + ff                                  # residual (dropout = identity)

    # ---- final LayerNorm of Encoders ----
    fin = N_LAYERS * _ROWS_PER_LAYER
    out = _layer_norm(x, lnb_ref[fin:fin + 1, :], lnb_ref[fin + 1:fin + 2, :])
    o_ref[...] = out.reshape(tb, seq, d).astype(o_ref.dtype)


# ------------------------------ host-side glue ---------------------------------
def _pick_tile_b(batch, seq):
    # aim for >= ROW_TARGET rows per block; cap rows per block (v7x has 64 MiB VMEM);
    # shrink to a divisor of batch so no padded edge blocks are ever produced.
    rows = min(ROW_CAP, max(ROW_TARGET, seq))
    tile = max(1, min(batch, rows // seq))
    while batch % tile:
        tile -= 1
    return tile


def transformer_encoders_forward(x, kparams):
    B, S, D = x.shape
    tile_b = _pick_tile_b(B, S)
    grid = (B // tile_b,)

    wqkv, bqkv, wo = kparams['wqkv'], kparams['bqkv'], kparams['wo']
    w1, b1, w2, lnb = kparams['w1'], kparams['b1'], kparams['w2'], kparams['lnb']

    out = pl.pallas_call(
        encoder_stack_kernel,
        out_shape=jax.ShapeDtypeStruct((B, S, D), x.dtype),
        grid=grid,
        in_specs=[
            pl.BlockSpec((tile_b, S, D), lambda b: (b, 0, 0)),   # activation tile
            # weights / packed params: constant block index -> stay VMEM-resident
            pl.BlockSpec(wqkv.shape, lambda b: (0, 0, 0)),
            pl.BlockSpec(bqkv.shape, lambda b: (0, 0, 0)),
            pl.BlockSpec(wo.shape,   lambda b: (0, 0, 0, 0)),
            pl.BlockSpec(w1.shape,   lambda b: (0, 0, 0)),
            pl.BlockSpec(b1.shape,   lambda b: (0, 0, 0)),
            pl.BlockSpec(w2.shape,   lambda b: (0, 0, 0)),
            pl.BlockSpec(lnb.shape,  lambda b: (0, 0)),
        ],
        out_specs=pl.BlockSpec((tile_b, S, D), lambda b: (b, 0, 0)),
        compiler_params=pltpu.CompilerParams(
            dimension_semantics=("parallel",),       # batch tiles -> both v7x TCs
            vmem_limit_bytes=32 * 1024 * 1024),
    )(x, wqkv, bqkv, wo, w1, b1, w2, lnb)
    return out


# --------------------------- deterministic params ------------------------------
def _xavier(key, fan_in, fan_out):
    # xavier_uniform_; weights stored as (in, out) so the kernel does y @ W.
    lim = math.sqrt(6.0 / (fan_in + fan_out))
    return jax.random.uniform(key, (fan_in, fan_out), jnp.float32, -lim, lim)


def _linear_bias(key, fan_in, fan_out):
    # PyTorch nn.Linear default bias init (biases are dim==1, untouched by xavier re-init).
    lim = 1.0 / math.sqrt(fan_in)
    return jax.random.uniform(key, (fan_out,), jnp.float32, -lim, lim)


def make_params(key):
    """'Natural' (PyTorch-layout) f32 parameters; weights stored (in, out)."""
    layers = []
    for _ in range(N_LAYERS):
        key, *ks = jax.random.split(key, 13)
        layers.append(dict(
            ln1_a=jnp.ones((D_MODEL,), jnp.float32),
            ln1_b=jnp.zeros((D_MODEL,), jnp.float32),
            wq=_xavier(ks[0], D_MODEL, D_MODEL), bq=_linear_bias(ks[1], D_MODEL, D_MODEL),
            wk=_xavier(ks[2], D_MODEL, D_MODEL), bk=_linear_bias(ks[3], D_MODEL, D_MODEL),
            wv=_xavier(ks[4], D_MODEL, D_MODEL), bv=_linear_bias(ks[5], D_MODEL, D_MODEL),
            wo=_xavier(ks[6], D_MODEL, D_MODEL), bo=_linear_bias(ks[7], D_MODEL, D_MODEL),
            ln2_a=jnp.ones((D_MODEL,), jnp.float32),
            ln2_b=jnp.zeros((D_MODEL,), jnp.float32),
            w1=_xavier(ks[8], D_MODEL, D_FF), b1=_linear_bias(ks[9], D_MODEL, D_FF),
            w2=_xavier(ks[10], D_FF, D_MODEL), b2=_linear_bias(ks[11], D_FF, D_MODEL),
        ))
    return dict(layers=layers,
                final_a=jnp.ones((D_MODEL,), jnp.float32),
                final_b=jnp.zeros((D_MODEL,), jnp.float32))


def pack_params(params, mxu_dtype=MXU_DTYPE):
    """Pack into the kernel layout: fused QKV, head-split Wo, bf16 MXU weights,
    and all LN gains/biases + small biases in ONE (rows, D) f32 array."""
    L = params['layers']
    wqkv = jnp.stack([jnp.concatenate([l['wq'], l['wk'], l['wv']], axis=1) for l in L])   # (L, D, 3D)
    bqkv = jnp.stack([jnp.concatenate([l['bq'], l['bk'], l['bv']])[None, :] for l in L])  # (L, 1, 3D)
    wo   = jnp.stack([l['wo'].reshape(N_HEADS, D_K, D_MODEL) for l in L])                 # (L, H, dk, D)
    w1   = jnp.stack([l['w1'] for l in L])                                                # (L, D, Dff)
    b1   = jnp.stack([l['b1'][None, :] for l in L])                                       # (L, 1, Dff)
    w2   = jnp.stack([l['w2'] for l in L])                                                # (L, Dff, D)
    rows = []
    for l in L:
        rows += [l['ln1_a'], l['ln1_b'], l['ln2_a'], l['ln2_b'], l['bo'], l['b2']]
    rows += [params['final_a'], params['final_b']]
    lnb = jnp.stack(rows)                                                                 # (6L+2, D)
    return dict(wqkv=wqkv.astype(mxu_dtype), bqkv=bqkv, wo=wo.astype(mxu_dtype),
                w1=w1.astype(mxu_dtype), b1=b1, w2=w2.astype(mxu_dtype), lnb=lnb)


# ------------------------ pure-JAX reference (for checking) --------------------
def _reference_forward(x, params, mm_dtype=jnp.float32):
    """Matches the PyTorch module; mm_dtype emulates the kernel's MXU-operand
    precision (accumulation stays f32)."""
    B, S, D = x.shape
    f32 = jnp.float32

    def ln(v, a, b):
        mean = jnp.mean(v, axis=-1, keepdims=True)
        diff = v - mean
        var = jnp.sum(diff * diff, axis=-1, keepdims=True) / (v.shape[-1] - 1)
        return a * diff / (jnp.sqrt(var) + EPS) + b

    def mm(a, w):
        return jnp.matmul(a.astype(mm_dtype), w.astype(mm_dtype),
                          preferred_element_type=f32)

    h = x.astype(f32)
    for lyr in params['layers']:
        y = ln(h, lyr['ln1_a'], lyr['ln1_b'])
        q = mm(y, lyr['wq']) + lyr['bq']
        k = mm(y, lyr['wk']) + lyr['bk']
        v = mm(y, lyr['wv']) + lyr['bv']
        q = q.reshape(B, S, N_HEADS, D_K).transpose(0, 2, 1, 3)
        k = k.reshape(B, S, N_HEADS, D_K).transpose(0, 2, 1, 3)
        v = v.reshape(B, S, N_HEADS, D_K).transpose(0, 2, 1, 3)
        scores = jnp.matmul(q.astype(mm_dtype),
                            jnp.swapaxes(k, -1, -2).astype(mm_dtype),
                            preferred_element_type=f32) / math.sqrt(D_K)
        p = jax.nn.softmax(scores, axis=-1)
        ctx = jnp.matmul(p.astype(mm_dtype), v.astype(mm_dtype),
                         preferred_element_type=f32)
        ctx = ctx.transpose(0, 2, 1, 3).reshape(B, S, D)
        h = h + (mm(ctx, lyr['wo']) + lyr['bo'])
        y2 = ln(h, lyr['ln2_a'], lyr['ln2_b'])
        ffn = mm(jnp.maximum(mm(y2, lyr['w1']) + lyr['b1'], 0.0), lyr['w2']) + lyr['b2']
        h = h + ffn
    return ln(h, params['final_a'], params['final_b'])


# ----------------------------------- main ---------------------------------------
if __name__ == "__main__":
    key = jax.random.PRNGKey(0)
    kx, kp = jax.random.split(key)

    B, S = 2, 8
    x = jax.random.normal(kx, (B, S, D_MODEL), dtype=jnp.float32)
    params = make_params(kp)
    kparams = pack_params(params)

    out = jax.jit(transformer_encoders_forward)(x, kparams)
    out = jax.block_until_ready(out)
    assert out.shape == (B, S, D_MODEL) and out.dtype == jnp.float32
    assert bool(jnp.all(jnp.isfinite(out)))

    # structural check: reference with identical bf16 MXU-operand precision
    ref_bf16 = _reference_forward(x, params, mm_dtype=MXU_DTYPE)
    err_struct = float(jnp.max(jnp.abs(out - ref_bf16)))
    assert err_struct < 5e-2, f"structural mismatch vs bf16-emulating reference: {err_struct}"

    # sanity check vs full-f32 reference (bf16 MXU operands + approx rcp widen the band)
    ref_f32 = _reference_forward(x, params, mm_dtype=jnp.float32)
    err_f32 = float(jnp.max(jnp.abs(out - ref_f32)))
    assert err_f32 < 2.5e-1, f"mismatch vs f32 reference: {err_f32}"

    print("KERNEL_OK")
</pallas_src>

<mosaic_0001>
module attributes {stable_mosaic.version = 11 : i64} {
  func.func @encoder_stack_kernel(%arg0: i32, %arg1: memref<2x8x32xf32, #tpu.memory_space<vmem>>, %arg2: memref<2x32x96xbf16, #tpu.memory_space<vmem>>, %arg3: memref<2x1x96xf32, #tpu.memory_space<vmem>>, %arg4: memref<2x4x8x32xbf16, #tpu.memory_space<vmem>>, %arg5: memref<2x32x64xbf16, #tpu.memory_space<vmem>>, %arg6: memref<2x1x64xf32, #tpu.memory_space<vmem>>, %arg7: memref<2x64x32xbf16, #tpu.memory_space<vmem>>, %arg8: memref<14x32xf32, #tpu.memory_space<vmem>>, %arg9: memref<2x8x32xf32, #tpu.memory_space<vmem>>) attributes {dimension_semantics = [#tpu.dimension_semantics<parallel>], iteration_bounds = array<i64: 1>, scalar_prefetch = 0 : i64, scratch_operands = 0 : i64, tpu.core_type = #tpu.core_type<tc>, window_params = [{transform_indices = @transform_0, window_bounds = array<i64: 2, 8, 32>}, {pipeline_mode = #tpu.pipeline_mode<synchronous>, transform_indices = @transform_1, window_bounds = array<i64: 2, 32, 96>}, {pipeline_mode = #tpu.pipeline_mode<synchronous>, transform_indices = @transform_2, window_bounds = array<i64: 2, 1, 96>}, {pipeline_mode = #tpu.pipeline_mode<synchronous>, transform_indices = @transform_3, window_bounds = array<i64: 2, 4, 8, 32>}, {pipeline_mode = #tpu.pipeline_mode<synchronous>, transform_indices = @transform_4, window_bounds = array<i64: 2, 32, 64>}, {pipeline_mode = #tpu.pipeline_mode<synchronous>, transform_indices = @transform_5, window_bounds = array<i64: 2, 1, 64>}, {pipeline_mode = #tpu.pipeline_mode<synchronous>, transform_indices = @transform_6, window_bounds = array<i64: 2, 64, 32>}, {pipeline_mode = #tpu.pipeline_mode<synchronous>, transform_indices = @transform_7, window_bounds = array<i64: 14, 32>}, {transform_indices = @transform_8, window_bounds = array<i64: 2, 8, 32>}]} {
    %c0 = arith.constant 0 : index
    %c0_0 = arith.constant 0 : index
    %c0_1 = arith.constant 0 : index
    %0 = vector.load %arg1[%c0, %c0_0, %c0_1] : memref<2x8x32xf32, #tpu.memory_space<vmem>>, vector<2x8x32xf32>
    %1 = vector.shape_cast %0 : vector<2x8x32xf32> to vector<16x32xf32>
    %c0_2 = arith.constant 0 : index
    %c0_3 = arith.constant 0 : index
    %2 = vector.load %arg8[%c0_2, %c0_3] : memref<14x32xf32, #tpu.memory_space<vmem>>, vector<1x32xf32>
    %c1 = arith.constant 1 : index
    %c0_4 = arith.constant 0 : index
    %3 = vector.load %arg8[%c1, %c0_4] : memref<14x32xf32, #tpu.memory_space<vmem>>, vector<1x32xf32>
    %cst = arith.constant dense<0.000000e+00> : vector<16xf32>
    %4 = vector.multi_reduction <add>, %1, %cst [1] : vector<16x32xf32> to vector<16xf32>
    %5 = vector.shape_cast %4 : vector<16xf32> to vector<16x1xf32>
    %cst_5 = arith.constant 3.200000e+01 : f32
    %6 = vector.broadcast %cst_5 : f32 to vector<16x1xf32>
    %7 = arith.divf %5, %6 : vector<16x1xf32>
    %8 = vector.broadcast %7 : vector<16x1xf32> to vector<16x32xf32>
    %9 = arith.subf %1, %8 : vector<16x32xf32>
    %10 = arith.mulf %9, %9 : vector<16x32xf32>
    %cst_6 = arith.constant dense<0.000000e+00> : vector<16xf32>
    %11 = vector.multi_reduction <add>, %10, %cst_6 [1] : vector<16x32xf32> to vector<16xf32>
    %12 = vector.shape_cast %11 : vector<16xf32> to vector<16x1xf32>
    %cst_7 = arith.constant 0.0322580636 : f32
    %13 = vector.broadcast %cst_7 : f32 to vector<16x1xf32>
    %14 = arith.mulf %12, %13 : vector<16x1xf32>
    %15 = math.sqrt %14 : vector<16x1xf32>
    %cst_8 = arith.constant 9.99999997E-7 : f32
    %16 = vector.broadcast %cst_8 : f32 to vector<16x1xf32>
    %17 = arith.addf %15, %16 : vector<16x1xf32>
    %18 = tpu.reciprocal %17 {approx = true} : vector<16x1xf32> -> vector<16x1xf32>
    %19 = vector.broadcast %18 : vector<16x1xf32> to vector<16x32xf32>
    %20 = arith.mulf %9, %19 : vector<16x32xf32>
    %21 = vector.broadcast %2 : vector<1x32xf32> to vector<16x32xf32>
    %22 = arith.mulf %21, %20 : vector<16x32xf32>
    %23 = vector.broadcast %3 : vector<1x32xf32> to vector<16x32xf32>
    %24 = arith.addf %22, %23 : vector<16x32xf32>
    %25 = arith.truncf %24 : vector<16x32xf32> to vector<16x32xbf16>
    %c0_9 = arith.constant 0 : index
    %c0_10 = arith.constant 0 : index
    %c0_11 = arith.constant 0 : index
    %26 = vector.load %arg2[%c0_9, %c0_10, %c0_11] : memref<2x32x96xbf16, #tpu.memory_space<vmem>>, vector<1x32x96xbf16>
    %27 = vector.shape_cast %26 : vector<1x32x96xbf16> to vector<32x96xbf16>
    %cst_12 = arith.constant dense<0.000000e+00> : vector<16x96xf32>
    %28 = tpu.matmul %25, %27, %cst_12 {dimension_numbers = #tpu.dot_dimension_numbers<[1], [0], [0], [1], [0, 0, 1, 1], [], []>} : vector<16x32xbf16>, vector<32x96xbf16>, vector<16x96xf32> -> vector<16x96xf32>
    %c0_13 = arith.constant 0 : index
    %c0_14 = arith.constant 0 : index
    %c0_15 = arith.constant 0 : index
    %29 = vector.load %arg3[%c0_13, %c0_14, %c0_15] : memref<2x1x96xf32, #tpu.memory_space<vmem>>, vector<1x1x96xf32>
    %30 = vector.shape_cast %29 : vector<1x1x96xf32> to vector<1x96xf32>
    %31 = vector.broadcast %30 : vector<1x96xf32> to vector<16x96xf32>
    %32 = arith.addf %28, %31 : vector<16x96xf32>
    %33 = vector.extract_strided_slice %32 {offsets = [0, 0], sizes = [16, 8], strides = [1, 1]} : vector<16x96xf32> to vector<16x8xf32>
    %34 = vector.shape_cast %33 : vector<16x8xf32> to vector<2x8x8xf32>
    %35 = vector.extract_strided_slice %32 {offsets = [0, 8], sizes = [16, 8], strides = [1, 1]} : vector<16x96xf32> to vector<16x8xf32>
    %36 = vector.shape_cast %35 : vector<16x8xf32> to vector<2x8x8xf32>
    %37 = vector.extract_strided_slice %32 {offsets = [0, 16], sizes = [16, 8], strides = [1, 1]} : vector<16x96xf32> to vector<16x8xf32>
    %38 = vector.shape_cast %37 : vector<16x8xf32> to vector<2x8x8xf32>
    %39 = vector.extract_strided_slice %32 {offsets = [0, 24], sizes = [16, 8], strides = [1, 1]} : vector<16x96xf32> to vector<16x8xf32>
    %40 = vector.shape_cast %39 : vector<16x8xf32> to vector<2x8x8xf32>
    %41 = tpu.concatenate %34, %36, %38, %40 in 0 : vector<2x8x8xf32>, vector<2x8x8xf32>, vector<2x8x8xf32>, vector<2x8x8xf32> -> vector<8x8x8xf32>
    %42 = vector.extract_strided_slice %32 {offsets = [0, 32], sizes = [16, 8], strides = [1, 1]} : vector<16x96xf32> to vector<16x8xf32>
    %43 = vector.shape_cast %42 : vector<16x8xf32> to vector<2x8x8xf32>
    %44 = vector.extract_strided_slice %32 {offsets = [0, 40], sizes = [16, 8], strides = [1, 1]} : vector<16x96xf32> to vector<16x8xf32>
    %45 = vector.shape_cast %44 : vector<16x8xf32> to vector<2x8x8xf32>
    %46 = vector.extract_strided_slice %32 {offsets = [0, 48], sizes = [16, 8], strides = [1, 1]} : vector<16x96xf32> to vector<16x8xf32>
    %47 = vector.shape_cast %46 : vector<16x8xf32> to vector<2x8x8xf32>
    %48 = vector.extract_strided_slice %32 {offsets = [0, 56], sizes = [16, 8], strides = [1, 1]} : vector<16x96xf32> to vector<16x8xf32>
    %49 = vector.shape_cast %48 : vector<16x8xf32> to vector<2x8x8xf32>
    %50 = tpu.concatenate %43, %45, %47, %49 in 0 : vector<2x8x8xf32>, vector<2x8x8xf32>, vector<2x8x8xf32>, vector<2x8x8xf32> -> vector<8x8x8xf32>
    %51 = vector.extract_strided_slice %32 {offsets = [0, 64], sizes = [16, 8], strides = [1, 1]} : vector<16x96xf32> to vector<16x8xf32>
    %52 = vector.shape_cast %51 : vector<16x8xf32> to vector<2x8x8xf32>
    %53 = vector.extract_strided_slice %32 {offsets = [0, 72], sizes = [16, 8], strides = [1, 1]} : vector<16x96xf32> to vector<16x8xf32>
    %54 = vector.shape_cast %53 : vector<16x8xf32> to vector<2x8x8xf32>
    %55 = vector.extract_strided_slice %32 {offsets = [0, 80], sizes = [16, 8], strides = [1, 1]} : vector<16x96xf32> to vector<16x8xf32>
    %56 = vector.shape_cast %55 : vector<16x8xf32> to vector<2x8x8xf32>
    %57 = vector.extract_strided_slice %32 {offsets = [0, 88], sizes = [16, 8], strides = [1, 1]} : vector<16x96xf32> to vector<16x8xf32>
    %58 = vector.shape_cast %57 : vector<16x8xf32> to vector<2x8x8xf32>
    %59 = tpu.concatenate %52, %54, %56, %58 in 0 : vector<2x8x8xf32>, vector<2x8x8xf32>, vector<2x8x8xf32>, vector<2x8x8xf32> -> vector<8x8x8xf32>
    %60 = arith.truncf %41 : vector<8x8x8xf32> to vector<8x8x8xbf16>
    %61 = arith.truncf %50 : vector<8x8x8xf32> to vector<8x8x8xbf16>
    "tpu.trace_start"() <{level = 10 : i32, message = "gsd,gtd->gst"}> : () -> ()
    %cst_16 = arith.constant dense<0.000000e+00> : vector<8x8x8xf32>
    %62 = tpu.matmul %60, %61, %cst_16 {dimension_numbers = #tpu.dot_dimension_numbers<[2], [2], [1], [1], [0, 0, 0, 1, 1, 1], [0], [0]>} : vector<8x8x8xbf16>, vector<8x8x8xbf16>, vector<8x8x8xf32> -> vector<8x8x8xf32>
    "tpu.trace_stop"() : () -> ()
    %cst_17 = arith.constant 0.353553385 : f32
    %63 = vector.broadcast %cst_17 : f32 to vector<8x8x8xf32>
    %64 = arith.mulf %62, %63 : vector<8x8x8xf32>
    %cst_18 = arith.constant dense<0xFF800000> : vector<8x8xf32>
    %65 = vector.multi_reduction <maximumf>, %64, %cst_18 [2] : vector<8x8x8xf32> to vector<8x8xf32>
    %66 = vector.shape_cast %65 : vector<8x8xf32> to vector<8x8x1xf32>
    %67 = vector.broadcast %66 : vector<8x8x1xf32> to vector<8x8x8xf32>
    %68 = arith.subf %64, %67 : vector<8x8x8xf32>
    %69 = math.exp %68 : vector<8x8x8xf32>
    %cst_19 = arith.constant dense<0.000000e+00> : vector<8x8xf32>
    %70 = vector.multi_reduction <add>, %69, %cst_19 [2] : vector<8x8x8xf32> to vector<8x8xf32>
    %71 = vector.shape_cast %70 : vector<8x8xf32> to vector<8x8x1xf32>
    %72 = tpu.reciprocal %71 {approx = true} : vector<8x8x1xf32> -> vector<8x8x1xf32>
    %73 = vector.broadcast %72 : vector<8x8x1xf32> to vector<8x8x8xf32>
    %74 = arith.mulf %69, %73 : vector<8x8x8xf32>
    %75 = arith.truncf %74 : vector<8x8x8xf32> to vector<8x8x8xbf16>
    %76 = arith.truncf %59 : vector<8x8x8xf32> to vector<8x8x8xbf16>
    "tpu.trace_start"() <{level = 10 : i32, message = "gst,gtd->gsd"}> : () -> ()
    %cst_20 = arith.constant dense<0.000000e+00> : vector<8x8x8xf32>
    %77 = tpu.matmul %75, %76, %cst_20 {dimension_numbers = #tpu.dot_dimension_numbers<[2], [1], [1], [2], [0, 0, 0, 1, 1, 2], [0], [0]>} : vector<8x8x8xbf16>, vector<8x8x8xbf16>, vector<8x8x8xf32> -> vector<8x8x8xf32>
    "tpu.trace_stop"() : () -> ()
    %78 = vector.shape_cast %77 : vector<8x8x8xf32> to vector<4x16x8xf32>
    %79 = arith.truncf %78 : vector<4x16x8xf32> to vector<4x16x8xbf16>
    %c0_21 = arith.constant 0 : index
    %c0_22 = arith.constant 0 : index
    %c0_23 = arith.constant 0 : index
    %c0_24 = arith.constant 0 : index
    %80 = vector.load %arg4[%c0_21, %c0_22, %c0_23, %c0_24] : memref<2x4x8x32xbf16, #tpu.memory_space<vmem>>, vector<1x4x8x32xbf16>
    %81 = vector.shape_cast %80 : vector<1x4x8x32xbf16> to vector<4x8x32xbf16>
    "tpu.trace_start"() <{level = 10 : i32, message = "hnk,hkd->hnd"}> : () -> ()
    %cst_25 = arith.constant dense<0.000000e+00> : vector<4x16x32xf32>
    %82 = tpu.matmul %79, %81, %cst_25 {dimension_numbers = #tpu.dot_dimension_numbers<[2], [1], [1], [2], [0, 0, 0, 1, 1, 2], [0], [0]>} : vector<4x16x8xbf16>, vector<4x8x32xbf16>, vector<4x16x32xf32> -> vector<4x16x32xf32>
    "tpu.trace_stop"() : () -> ()
    %cst_26 = arith.constant dense<0.000000e+00> : vector<16x32xf32>
    %83 = vector.multi_reduction <add>, %82, %cst_26 [0] : vector<4x16x32xf32> to vector<16x32xf32>
    %c4 = arith.constant 4 : index
    %c0_27 = arith.constant 0 : index
    %84 = vector.load %arg8[%c4, %c0_27] : memref<14x32xf32, #tpu.memory_space<vmem>>, vector<1x32xf32>
    %85 = vector.broadcast %84 : vector<1x32xf32> to vector<16x32xf32>
    %86 = arith.addf %83, %85 : vector<16x32xf32>
    %87 = arith.addf %1, %86 : vector<16x32xf32>
    %c2 = arith.constant 2 : index
    %c0_28 = arith.constant 0 : index
    %88 = vector.load %arg8[%c2, %c0_28] : memref<14x32xf32, #tpu.memory_space<vmem>>, vector<1x32xf32>
    %c3 = arith.constant 3 : index
    %c0_29 = arith.constant 0 : index
    %89 = vector.load %arg8[%c3, %c0_29] : memref<14x32xf32, #tpu.memory_space<vmem>>, vector<1x32xf32>
    %cst_30 = arith.constant dense<0.000000e+00> : vector<16xf32>
    %90 = vector.multi_reduction <add>, %87, %cst_30 [1] : vector<16x32xf32> to vector<16xf32>
    %91 = vector.shape_cast %90 : vector<16xf32> to vector<16x1xf32>
    %cst_31 = arith.constant 3.200000e+01 : f32
    %92 = vector.broadcast %cst_31 : f32 to vector<16x1xf32>
    %93 = arith.divf %91, %92 : vector<16x1xf32>
    %94 = vector.broadcast %93 : vector<16x1xf32> to vector<16x32xf32>
    %95 = arith.subf %87, %94 : vector<16x32xf32>
    %96 = arith.mulf %95, %95 : vector<16x32xf32>
    %cst_32 = arith.constant dense<0.000000e+00> : vector<16xf32>
    %97 = vector.multi_reduction <add>, %96, %cst_32 [1] : vector<16x32xf32> to vector<16xf32>
    %98 = vector.shape_cast %97 : vector<16xf32> to vector<16x1xf32>
    %cst_33 = arith.constant 0.0322580636 : f32
    %99 = vector.broadcast %cst_33 : f32 to vector<16x1xf32>
    %100 = arith.mulf %98, %99 : vector<16x1xf32>
    %101 = math.sqrt %100 : vector<16x1xf32>
    %cst_34 = arith.constant 9.99999997E-7 : f32
    %102 = vector.broadcast %cst_34 : f32 to vector<16x1xf32>
    %103 = arith.addf %101, %102 : vector<16x1xf32>
    %104 = tpu.reciprocal %103 {approx = true} : vector<16x1xf32> -> vector<16x1xf32>
    %105 = vector.broadcast %104 : vector<16x1xf32> to vector<16x32xf32>
    %106 = arith.mulf %95, %105 : vector<16x32xf32>
    %107 = vector.broadcast %88 : vector<1x32xf32> to vector<16x32xf32>
    %108 = arith.mulf %107, %106 : vector<16x32xf32>
    %109 = vector.broadcast %89 : vector<1x32xf32> to vector<16x32xf32>
    %110 = arith.addf %108, %109 : vector<16x32xf32>
    %111 = arith.truncf %110 : vector<16x32xf32> to vector<16x32xbf16>
    %c0_35 = arith.constant 0 : index
    %c0_36 = arith.constant 0 : index
    %c0_37 = arith.constant 0 : index
    %112 = vector.load %arg5[%c0_35, %c0_36, %c0_37] : memref<2x32x64xbf16, #tpu.memory_space<vmem>>, vector<1x32x64xbf16>
    %113 = vector.shape_cast %112 : vector<1x32x64xbf16> to vector<32x64xbf16>
    %cst_38 = arith.constant dense<0.000000e+00> : vector<16x64xf32>
    %114 = tpu.matmul %111, %113, %cst_38 {dimension_numbers = #tpu.dot_dimension_numbers<[1], [0], [0], [1], [0, 0, 1, 1], [], []>} : vector<16x32xbf16>, vector<32x64xbf16>, vector<16x64xf32> -> vector<16x64xf32>
    %c0_39 = arith.constant 0 : index
    %c0_40 = arith.constant 0 : index
    %c0_41 = arith.constant 0 : index
    %115 = vector.load %arg6[%c0_39, %c0_40, %c0_41] : memref<2x1x64xf32, #tpu.memory_space<vmem>>, vector<1x1x64xf32>
    %116 = vector.shape_cast %115 : vector<1x1x64xf32> to vector<1x64xf32>
    %117 = vector.broadcast %116 : vector<1x64xf32> to vector<16x64xf32>
    %118 = arith.addf %114, %117 : vector<16x64xf32>
    %cst_42 = arith.constant 0.000000e+00 : f32
    %119 = vector.broadcast %cst_42 : f32 to vector<16x64xf32>
    %120 = arith.maximumf %118, %119 : vector<16x64xf32>
    %121 = arith.truncf %120 : vector<16x64xf32> to vector<16x64xbf16>
    %c0_43 = arith.constant 0 : index
    %c0_44 = arith.constant 0 : index
    %c0_45 = arith.constant 0 : index
    %122 = vector.load %arg7[%c0_43, %c0_44, %c0_45] : memref<2x64x32xbf16, #tpu.memory_space<vmem>>, vector<1x64x32xbf16>
    %123 = vector.shape_cast %122 : vector<1x64x32xbf16> to vector<64x32xbf16>
    %cst_46 = arith.constant dense<0.000000e+00> : vector<16x32xf32>
    %124 = tpu.matmul %121, %123, %cst_46 {dimension_numbers = #tpu.dot_dimension_numbers<[1], [0], [0], [1], [0, 0, 1, 1], [], []>} : vector<16x64xbf16>, vector<64x32xbf16>, vector<16x32xf32> -> vector<16x32xf32>
    %c5 = arith.constant 5 : index
    %c0_47 = arith.constant 0 : index
    %125 = vector.load %arg8[%c5, %c0_47] : memref<14x32xf32, #tpu.memory_space<vmem>>, vector<1x32xf32>
    %126 = vector.broadcast %125 : vector<1x32xf32> to vector<16x32xf32>
    %127 = arith.addf %124, %126 : vector<16x32xf32>
    %128 = arith.addf %87, %127 : vector<16x32xf32>
    %c6 = arith.constant 6 : index
    %c0_48 = arith.constant 0 : index
    %129 = vector.load %arg8[%c6, %c0_48] : memref<14x32xf32, #tpu.memory_space<vmem>>, vector<1x32xf32>
    %c7 = arith.constant 7 : index
    %c0_49 = arith.constant 0 : index
    %130 = vector.load %arg8[%c7, %c0_49] : memref<14x32xf32, #tpu.memory_space<vmem>>, vector<1x32xf32>
    %cst_50 = arith.constant dense<0.000000e+00> : vector<16xf32>
    %131 = vector.multi_reduction <add>, %128, %cst_50 [1] : vector<16x32xf32> to vector<16xf32>
    %132 = vector.shape_cast %131 : vector<16xf32> to vector<16x1xf32>
    %cst_51 = arith.constant 3.200000e+01 : f32
    %133 = vector.broadcast %cst_51 : f32 to vector<16x1xf32>
    %134 = arith.divf %132, %133 : vector<16x1xf32>
    %135 = vector.broadcast %134 : vector<16x1xf32> to vector<16x32xf32>
    %136 = arith.subf %128, %135 : vector<16x32xf32>
    %137 = arith.mulf %136, %136 : vector<16x32xf32>
    %cst_52 = arith.constant dense<0.000000e+00> : vector<16xf32>
    %138 = vector.multi_reduction <add>, %137, %cst_52 [1] : vector<16x32xf32> to vector<16xf32>
    %139 = vector.shape_cast %138 : vector<16xf32> to vector<16x1xf32>
    %cst_53 = arith.constant 0.0322580636 : f32
    %140 = vector.broadcast %cst_53 : f32 to vector<16x1xf32>
    %141 = arith.mulf %139, %140 : vector<16x1xf32>
    %142 = math.sqrt %141 : vector<16x1xf32>
    %cst_54 = arith.constant 9.99999997E-7 : f32
    %143 = vector.broadcast %cst_54 : f32 to vector<16x1xf32>
    %144 = arith.addf %142, %143 : vector<16x1xf32>
    %145 = tpu.reciprocal %144 {approx = true} : vector<16x1xf32> -> vector<16x1xf32>
    %146 = vector.broadcast %145 : vector<16x1xf32> to vector<16x32xf32>
    %147 = arith.mulf %136, %146 : vector<16x32xf32>
    %148 = vector.broadcast %129 : vector<1x32xf32> to vector<16x32xf32>
    %149 = arith.mulf %148, %147 : vector<16x32xf32>
    %150 = vector.broadcast %130 : vector<1x32xf32> to vector<16x32xf32>
    %151 = arith.addf %149, %150 : vector<16x32xf32>
    %152 = arith.truncf %151 : vector<16x32xf32> to vector<16x32xbf16>
    %c1_55 = arith.constant 1 : index
    %c0_56 = arith.constant 0 : index
    %c0_57 = arith.constant 0 : index
    %153 = vector.load %arg2[%c1_55, %c0_56, %c0_57] : memref<2x32x96xbf16, #tpu.memory_space<vmem>>, vector<1x32x96xbf16>
    %154 = vector.shape_cast %153 : vector<1x32x96xbf16> to vector<32x96xbf16>
    %cst_58 = arith.constant dense<0.000000e+00> : vector<16x96xf32>
    %155 = tpu.matmul %152, %154, %cst_58 {dimension_numbers = #tpu.dot_dimension_numbers<[1], [0], [0], [1], [0, 0, 1, 1], [], []>} : vector<16x32xbf16>, vector<32x96xbf16>, vector<16x96xf32> -> vector<16x96xf32>
    %c1_59 = arith.constant 1 : index
    %c0_60 = arith.constant 0 : index
    %c0_61 = arith.constant 0 : index
    %156 = vector.load %arg3[%c1_59, %c0_60, %c0_61] : memref<2x1x96xf32, #tpu.memory_space<vmem>>, vector<1x1x96xf32>
    %157 = vector.shape_cast %156 : vector<1x1x96xf32> to vector<1x96xf32>
    %158 = vector.broadcast %157 : vector<1x96xf32> to vector<16x96xf32>
    %159 = arith.addf %155, %158 : vector<16x96xf32>
    %160 = vector.extract_strided_slice %159 {offsets = [0, 0], sizes = [16, 8], strides = [1, 1]} : vector<16x96xf32> to vector<16x8xf32>
    %161 = vector.shape_cast %160 : vector<16x8xf32> to vector<2x8x8xf32>
    %162 = vector.extract_strided_slice %159 {offsets = [0, 8], sizes = [16, 8], strides = [1, 1]} : vector<16x96xf32> to vector<16x8xf32>
    %163 = vector.shape_cast %162 : vector<16x8xf32> to vector<2x8x8xf32>
    %164 = vector.extract_strided_slice %159 {offsets = [0, 16], sizes = [16, 8], strides = [1, 1]} : vector<16x96xf32> to vector<16x8xf32>
    %165 = vector.shape_cast %164 : vector<16x8xf32> to vector<2x8x8xf32>
    %166 = vector.extract_strided_slice %159 {offsets = [0, 24], sizes = [16, 8], strides = [1, 1]} : vector<16x96xf32> to vector<16x8xf32>
    %167 = vector.shape_cast %166 : vector<16x8xf32> to vector<2x8x8xf32>
    %168 = tpu.concatenate %161, %163, %165, %167 in 0 : vector<2x8x8xf32>, vector<2x8x8xf32>, vector<2x8x8xf32>, vector<2x8x8xf32> -> vector<8x8x8xf32>
    %169 = vector.extract_strided_slice %159 {offsets = [0, 32], sizes = [16, 8], strides = [1, 1]} : vector<16x96xf32> to vector<16x8xf32>
    %170 = vector.shape_cast %169 : vector<16x8xf32> to vector<2x8x8xf32>
    %171 = vector.extract_strided_slice %159 {offsets = [0, 40], sizes = [16, 8], strides = [1, 1]} : vector<16x96xf32> to vector<16x8xf32>
    %172 = vector.shape_cast %171 : vector<16x8xf32> to vector<2x8x8xf32>
    %173 = vector.extract_strided_slice %159 {offsets = [0, 48], sizes = [16, 8], strides = [1, 1]} : vector<16x96xf32> to vector<16x8xf32>
    %174 = vector.shape_cast %173 : vector<16x8xf32> to vector<2x8x8xf32>
    %175 = vector.extract_strided_slice %159 {offsets = [0, 56], sizes = [16, 8], strides = [1, 1]} : vector<16x96xf32> to vector<16x8xf32>
    %176 = vector.shape_cast %175 : vector<16x8xf32> to vector<2x8x8xf32>
    %177 = tpu.concatenate %170, %172, %174, %176 in 0 : vector<2x8x8xf32>, vector<2x8x8xf32>, vector<2x8x8xf32>, vector<2x8x8xf32> -> vector<8x8x8xf32>
    %178 = vector.extract_strided_slice %159 {offsets = [0, 64], sizes = [16, 8], strides = [1, 1]} : vector<16x96xf32> to vector<16x8xf32>
    %179 = vector.shape_cast %178 : vector<16x8xf32> to vector<2x8x8xf32>
    %180 = vector.extract_strided_slice %159 {offsets = [0, 72], sizes = [16, 8], strides = [1, 1]} : vector<16x96xf32> to vector<16x8xf32>
    %181 = vector.shape_cast %180 : vector<16x8xf32> to vector<2x8x8xf32>
    %182 = vector.extract_strided_slice %159 {offsets = [0, 80], sizes = [16, 8], strides = [1, 1]} : vector<16x96xf32> to vector<16x8xf32>
    %183 = vector.shape_cast %182 : vector<16x8xf32> to vector<2x8x8xf32>
    %184 = vector.extract_strided_slice %159 {offsets = [0, 88], sizes = [16, 8], strides = [1, 1]} : vector<16x96xf32> to vector<16x8xf32>
    %185 = vector.shape_cast %184 : vector<16x8xf32> to vector<2x8x8xf32>
    %186 = tpu.concatenate %179, %181, %183, %185 in 0 : vector<2x8x8xf32>, vector<2x8x8xf32>, vector<2x8x8xf32>, vector<2x8x8xf32> -> vector<8x8x8xf32>
    %187 = arith.truncf %168 : vector<8x8x8xf32> to vector<8x8x8xbf16>
    %188 = arith.truncf %177 : vector<8x8x8xf32> to vector<8x8x8xbf16>
    "tpu.trace_start"() <{level = 10 : i32, message = "gsd,gtd->gst"}> : () -> ()
    %cst_62 = arith.constant dense<0.000000e+00> : vector<8x8x8xf32>
    %189 = tpu.matmul %187, %188, %cst_62 {dimension_numbers = #tpu.dot_dimension_numbers<[2], [2], [1], [1], [0, 0, 0, 1, 1, 1], [0], [0]>} : vector<8x8x8xbf16>, vector<8x8x8xbf16>, vector<8x8x8xf32> -> vector<8x8x8xf32>
    "tpu.trace_stop"() : () -> ()
    %cst_63 = arith.constant 0.353553385 : f32
    %190 = vector.broadcast %cst_63 : f32 to vector<8x8x8xf32>
    %191 = arith.mulf %189, %190 : vector<8x8x8xf32>
    %cst_64 = arith.constant dense<0xFF800000> : vector<8x8xf32>
    %192 = vector.multi_reduction <maximumf>, %191, %cst_64 [2] : vector<8x8x8xf32> to vector<8x8xf32>
    %193 = vector.shape_cast %192 : vector<8x8xf32> to vector<8x8x1xf32>
    %194 = vector.broadcast %193 : vector<8x8x1xf32> to vector<8x8x8xf32>
    %195 = arith.subf %191, %194 : vector<8x8x8xf32>
    %196 = math.exp %195 : vector<8x8x8xf32>
    %cst_65 = arith.constant dense<0.000000e+00> : vector<8x8xf32>
    %197 = vector.multi_reduction <add>, %196, %cst_65 [2] : vector<8x8x8xf32> to vector<8x8xf32>
    %198 = vector.shape_cast %197 : vector<8x8xf32> to vector<8x8x1xf32>
    %199 = tpu.reciprocal %198 {approx = true} : vector<8x8x1xf32> -> vector<8x8x1xf32>
    %200 = vector.broadcast %199 : vector<8x8x1xf32> to vector<8x8x8xf32>
    %201 = arith.mulf %196, %200 : vector<8x8x8xf32>
    %202 = arith.truncf %201 : vector<8x8x8xf32> to vector<8x8x8xbf16>
    %203 = arith.truncf %186 : vector<8x8x8xf32> to vector<8x8x8xbf16>
    "tpu.trace_start"() <{level = 10 : i32, message = "gst,gtd->gsd"}> : () -> ()
    %cst_66 = arith.constant dense<0.000000e+00> : vector<8x8x8xf32>
    %204 = tpu.matmul %202, %203, %cst_66 {dimension_numbers = #tpu.dot_dimension_numbers<[2], [1], [1], [2], [0, 0, 0, 1, 1, 2], [0], [0]>} : vector<8x8x8xbf16>, vector<8x8x8xbf16>, vector<8x8x8xf32> -> vector<8x8x8xf32>
    "tpu.trace_stop"() : () -> ()
    %205 = vector.shape_cast %204 : vector<8x8x8xf32> to vector<4x16x8xf32>
    %206 = arith.truncf %205 : vector<4x16x8xf32> to vector<4x16x8xbf16>
    %c1_67 = arith.constant 1 : index
    %c0_68 = arith.constant 0 : index
    %c0_69 = arith.constant 0 : index
    %c0_70 = arith.constant 0 : index
    %207 = vector.load %arg4[%c1_67, %c0_68, %c0_69, %c0_70] : memref<2x4x8x32xbf16, #tpu.memory_space<vmem>>, vector<1x4x8x32xbf16>
    %208 = vector.shape_cast %207 : vector<1x4x8x32xbf16> to vector<4x8x32xbf16>
    "tpu.trace_start"() <{level = 10 : i32, message = "hnk,hkd->hnd"}> : () -> ()
    %cst_71 = arith.constant dense<0.000000e+00> : vector<4x16x32xf32>
    %209 = tpu.matmul %206, %208, %cst_71 {dimension_numbers = #tpu.dot_dimension_numbers<[2], [1], [1], [2], [0, 0, 0, 1, 1, 2], [0], [0]>} : vector<4x16x8xbf16>, vector<4x8x32xbf16>, vector<4x16x32xf32> -> vector<4x16x32xf32>
    "tpu.trace_stop"() : () -> ()
    %cst_72 = arith.constant dense<0.000000e+00> : vector<16x32xf32>
    %210 = vector.multi_reduction <add>, %209, %cst_72 [0] : vector<4x16x32xf32> to vector<16x32xf32>
    %c10 = arith.constant 10 : index
    %c0_73 = arith.constant 0 : index
    %211 = vector.load %arg8[%c10, %c0_73] : memref<14x32xf32, #tpu.memory_space<vmem>>, vector<1x32xf32>
    %212 = vector.broadcast %211 : vector<1x32xf32> to vector<16x32xf32>
    %213 = arith.addf %210, %212 : vector<16x32xf32>
    %214 = arith.addf %128, %213 : vector<16x32xf32>
    %c8 = arith.constant 8 : index
    %c0_74 = arith.constant 0 : index
    %215 = vector.load %arg8[%c8, %c0_74] : memref<14x32xf32, #tpu.memory_space<vmem>>, vector<1x32xf32>
    %c9 = arith.constant 9 : index
    %c0_75 = arith.constant 0 : index
    %216 = vector.load %arg8[%c9, %c0_75] : memref<14x32xf32, #tpu.memory_space<vmem>>, vector<1x32xf32>
    %cst_76 = arith.constant dense<0.000000e+00> : vector<16xf32>
    %217 = vector.multi_reduction <add>, %214, %cst_76 [1] : vector<16x32xf32> to vector<16xf32>
    %218 = vector.shape_cast %217 : vector<16xf32> to vector<16x1xf32>
    %cst_77 = arith.constant 3.200000e+01 : f32
    %219 = vector.broadcast %cst_77 : f32 to vector<16x1xf32>
    %220 = arith.divf %218, %219 : vector<16x1xf32>
    %221 = vector.broadcast %220 : vector<16x1xf32> to vector<16x32xf32>
    %222 = arith.subf %214, %221 : vector<16x32xf32>
    %223 = arith.mulf %222, %222 : vector<16x32xf32>
    %cst_78 = arith.constant dense<0.000000e+00> : vector<16xf32>
    %224 = vector.multi_reduction <add>, %223, %cst_78 [1] : vector<16x32xf32> to vector<16xf32>
    %225 = vector.shape_cast %224 : vector<16xf32> to vector<16x1xf32>
    %cst_79 = arith.constant 0.0322580636 : f32
    %226 = vector.broadcast %cst_79 : f32 to vector<16x1xf32>
    %227 = arith.mulf %225, %226 : vector<16x1xf32>
    %228 = math.sqrt %227 : vector<16x1xf32>
    %cst_80 = arith.constant 9.99999997E-7 : f32
    %229 = vector.broadcast %cst_80 : f32 to vector<16x1xf32>
    %230 = arith.addf %228, %229 : vector<16x1xf32>
    %231 = tpu.reciprocal %230 {approx = true} : vector<16x1xf32> -> vector<16x1xf32>
    %232 = vector.broadcast %231 : vector<16x1xf32> to vector<16x32xf32>
    %233 = arith.mulf %222, %232 : vector<16x32xf32>
    %234 = vector.broadcast %215 : vector<1x32xf32> to vector<16x32xf32>
    %235 = arith.mulf %234, %233 : vector<16x32xf32>
    %236 = vector.broadcast %216 : vector<1x32xf32> to vector<16x32xf32>
    %237 = arith.addf %235, %236 : vector<16x32xf32>
    %238 = arith.truncf %237 : vector<16x32xf32> to vector<16x32xbf16>
    %c1_81 = arith.constant 1 : index
    %c0_82 = arith.constant 0 : index
    %c0_83 = arith.constant 0 : index
    %239 = vector.load %arg5[%c1_81, %c0_82, %c0_83] : memref<2x32x64xbf16, #tpu.memory_space<vmem>>, vector<1x32x64xbf16>
    %240 = vector.shape_cast %239 : vector<1x32x64xbf16> to vector<32x64xbf16>
    %cst_84 = arith.constant dense<0.000000e+00> : vector<16x64xf32>
    %241 = tpu.matmul %238, %240, %cst_84 {dimension_numbers = #tpu.dot_dimension_numbers<[1], [0], [0], [1], [0, 0, 1, 1], [], []>} : vector<16x32xbf16>, vector<32x64xbf16>, vector<16x64xf32> -> vector<16x64xf32>
    %c1_85 = arith.constant 1 : index
    %c0_86 = arith.constant 0 : index
    %c0_87 = arith.constant 0 : index
    %242 = vector.load %arg6[%c1_85, %c0_86, %c0_87] : memref<2x1x64xf32, #tpu.memory_space<vmem>>, vector<1x1x64xf32>
    %243 = vector.shape_cast %242 : vector<1x1x64xf32> to vector<1x64xf32>
    %244 = vector.broadcast %243 : vector<1x64xf32> to vector<16x64xf32>
    %245 = arith.addf %241, %244 : vector<16x64xf32>
    %cst_88 = arith.constant 0.000000e+00 : f32
    %246 = vector.broadcast %cst_88 : f32 to vector<16x64xf32>
    %247 = arith.maximumf %245, %246 : vector<16x64xf32>
    %248 = arith.truncf %247 : vector<16x64xf32> to vector<16x64xbf16>
    %c1_89 = arith.constant 1 : index
    %c0_90 = arith.constant 0 : index
    %c0_91 = arith.constant 0 : index
    %249 = vector.load %arg7[%c1_89, %c0_90, %c0_91] : memref<2x64x32xbf16, #tpu.memory_space<vmem>>, vector<1x64x32xbf16>
    %250 = vector.shape_cast %249 : vector<1x64x32xbf16> to vector<64x32xbf16>
    %cst_92 = arith.constant dense<0.000000e+00> : vector<16x32xf32>
    %251 = tpu.matmul %248, %250, %cst_92 {dimension_numbers = #tpu.dot_dimension_numbers<[1], [0], [0], [1], [0, 0, 1, 1], [], []>} : vector<16x64xbf16>, vector<64x32xbf16>, vector<16x32xf32> -> vector<16x32xf32>
    %c11 = arith.constant 11 : index
    %c0_93 = arith.constant 0 : index
    %252 = vector.load %arg8[%c11, %c0_93] : memref<14x32xf32, #tpu.memory_space<vmem>>, vector<1x32xf32>
    %253 = vector.broadcast %252 : vector<1x32xf32> to vector<16x32xf32>
    %254 = arith.addf %251, %253 : vector<16x32xf32>
    %255 = arith.addf %214, %254 : vector<16x32xf32>
    %c12 = arith.constant 12 : index
    %c0_94 = arith.constant 0 : index
    %256 = vector.load %arg8[%c12, %c0_94] : memref<14x32xf32, #tpu.memory_space<vmem>>, vector<1x32xf32>
    %c13 = arith.constant 13 : index
    %c0_95 = arith.constant 0 : index
    %257 = vector.load %arg8[%c13, %c0_95] : memref<14x32xf32, #tpu.memory_space<vmem>>, vector<1x32xf32>
    %cst_96 = arith.constant dense<0.000000e+00> : vector<16xf32>
    %258 = vector.multi_reduction <add>, %255, %cst_96 [1] : vector<16x32xf32> to vector<16xf32>
    %259 = vector.shape_cast %258 : vector<16xf32> to vector<16x1xf32>
    %cst_97 = arith.constant 3.200000e+01 : f32
    %260 = vector.broadcast %cst_97 : f32 to vector<16x1xf32>
    %261 = arith.divf %259, %260 : vector<16x1xf32>
    %262 = vector.broadcast %261 : vector<16x1xf32> to vector<16x32xf32>
    %263 = arith.subf %255, %262 : vector<16x32xf32>
    %264 = arith.mulf %263, %263 : vector<16x32xf32>
    %cst_98 = arith.constant dense<0.000000e+00> : vector<16xf32>
    %265 = vector.multi_reduction <add>, %264, %cst_98 [1] : vector<16x32xf32> to vector<16xf32>
    %266 = vector.shape_cast %265 : vector<16xf32> to vector<16x1xf32>
    %cst_99 = arith.constant 0.0322580636 : f32
    %267 = vector.broadcast %cst_99 : f32 to vector<16x1xf32>
    %268 = arith.mulf %266, %267 : vector<16x1xf32>
    %269 = math.sqrt %268 : vector<16x1xf32>
    %cst_100 = arith.constant 9.99999997E-7 : f32
    %270 = vector.broadcast %cst_100 : f32 to vector<16x1xf32>
    %271 = arith.addf %269, %270 : vector<16x1xf32>
    %272 = tpu.reciprocal %271 {approx = true} : vector<16x1xf32> -> vector<16x1xf32>
    %273 = vector.broadcast %272 : vector<16x1xf32> to vector<16x32xf32>
    %274 = arith.mulf %263, %273 : vector<16x32xf32>
    %275 = vector.broadcast %256 : vector<1x32xf32> to vector<16x32xf32>
    %276 = arith.mulf %275, %274 : vector<16x32xf32>
    %277 = vector.broadcast %257 : vector<1x32xf32> to vector<16x32xf32>
    %278 = arith.addf %276, %277 : vector<16x32xf32>
    %279 = vector.shape_cast %278 : vector<16x32xf32> to vector<2x8x32xf32>
    %c0_101 = arith.constant 0 : index
    %c0_102 = arith.constant 0 : index
    %c0_103 = arith.constant 0 : index
    %280 = vector.load %arg9[%c0_101, %c0_102, %c0_103] : memref<2x8x32xf32, #tpu.memory_space<vmem>>, vector<2x8x32xf32>
    tpu.vector_store %arg9[%c0_101, %c0_102, %c0_103], %279 {strides = array<i32>} : memref<2x8x32xf32, #tpu.memory_space<vmem>>, vector<2x8x32xf32>,
    return
  }
  func.func @transform_0(%arg0: i32) -> (i32, i32, i32) {
    %c0_i32 = arith.constant 0 : i32
    %c0_i32_0 = arith.constant 0 : i32
    %c0_i32_1 = arith.constant 0 : i32
    return %arg0, %c0_i32, %c0_i32_0 : i32, i32, i32
  }
  func.func @transform_1(%arg0: i32) -> (i32, i32, i32) {
    %c0_i32 = arith.constant 0 : i32
    %c0_i32_0 = arith.constant 0 : i32
    %c0_i32_1 = arith.constant 0 : i32
    %c0_i32_2 = arith.constant 0 : i32
    return %c0_i32, %c0_i32_0, %c0_i32_1 : i32, i32, i32
  }
  func.func @transform_2(%arg0: i32) -> (i32, i32, i32) {
    %c0_i32 = arith.constant 0 : i32
    %c0_i32_0 = arith.constant 0 : i32
    %c0_i32_1 = arith.constant 0 : i32
    %c0_i32_2 = arith.constant 0 : i32
    return %c0_i32, %c0_i32_0, %c0_i32_1 : i32, i32, i32
  }
  func.func @transform_3(%arg0: i32) -> (i32, i32, i32, i32) {
    %c0_i32 = arith.constant 0 : i32
    %c0_i32_0 = arith.constant 0 : i32
    %c0_i32_1 = arith.constant 0 : i32
    %c0_i32_2 = arith.constant 0 : i32
    %c0_i32_3 = arith.constant 0 : i32
    return %c0_i32, %c0_i32_0, %c0_i32_1, %c0_i32_2 : i32, i32, i32, i32
  }
  func.func @transform_4(%arg0: i32) -> (i32, i32, i32) {
    %c0_i32 = arith.constant 0 : i32
    %c0_i32_0 = arith.constant 0 : i32
    %c0_i32_1 = arith.constant 0 : i32
    %c0_i32_2 = arith.constant 0 : i32
    return %c0_i32, %c0_i32_0, %c0_i32_1 : i32, i32, i32
  }
  func.func @transform_5(%arg0: i32) -> (i32, i32, i32) {
    %c0_i32 = arith.constant 0 : i32
    %c0_i32_0 = arith.constant 0 : i32
    %c0_i32_1 = arith.constant 0 : i32
    %c0_i32_2 = arith.constant 0 : i32
    return %c0_i32, %c0_i32_0, %c0_i32_1 : i32, i32, i32
  }
  func.func @transform_6(%arg0: i32) -> (i32, i32, i32) {
    %c0_i32 = arith.constant 0 : i32
    %c0_i32_0 = arith.constant 0 : i32
    %c0_i32_1 = arith.constant 0 : i32
    %c0_i32_2 = arith.constant 0 : i32
    return %c0_i32, %c0_i32_0, %c0_i32_1 : i32, i32, i32
  }
  func.func @transform_7(%arg0: i32) -> (i32, i32) {
    %c0_i32 = arith.constant 0 : i32
    %c0_i32_0 = arith.constant 0 : i32
    %c0_i32_1 = arith.constant 0 : i32
    return %c0_i32, %c0_i32_0 : i32, i32
  }
  func.func @transform_8(%arg0: i32) -> (i32, i32, i32) {
    %c0_i32 = arith.constant 0 : i32
    %c0_i32_0 = arith.constant 0 : i32
    %c0_i32_1 = arith.constant 0 : i32
    return %arg0, %c0_i32, %c0_i32_0 : i32, i32, i32
  }
}

</mosaic_0001>

<bundles_post_ra>
// kernel: transformer_encoders_forward.1
= control target key start
LH: loop header
LB: loop body
LE: loop exit
PB: predicated region body
PF: predicated region fallthrough
CT: control target
= control target key end

     0   :  { %13 = vsyncpa [#allocation3], 0  ;;  %s4559_s0 = inlined_call_operand.hbm [shape: f32[2,8,32], index: 0, kind: input, shape index: {}]   ;;  %s4560_s1 = inlined_call_operand.vmem [shape: bf16[2,32,96], index: 1, kind: input, shape index: {}]   ;;  %s4561_s2 = inlined_call_operand.vmem [shape: f32[2,1,96], index: 2, kind: input, shape index: {}]   ;;  %s4562_s3 = inlined_call_operand.vmem [shape: bf16[2,4,8,32], index: 3, kind: input, shape index: {}]   ;;  %s4563_s4 = inlined_call_operand.vmem [shape: bf16[2,32,64], index: 4, kind: input, shape index: {}]   ;;  %s4564_s5 = inlined_call_operand.hbm [shape: f32[2,1,64], index: 5, kind: input, shape index: {}]   ;;  %s4565_s6 = inlined_call_operand.vmem [shape: bf16[2,64,32], index: 6, kind: input, shape index: {}]   ;;  %s4566_s7 = inlined_call_operand.hbm [shape: f32[14,32], index: 7, kind: input, shape index: {}]   ;;  %s4567_s8 = inlined_call_operand.hbm [shape: f32[2,8,32], index: 8, kind: output, shape index: {}]  }
   0x1   :  { %14 = vsyncpa [#allocation6], 0 }
   0x2   :  { %15 = vsyncpa [#allocation4], 0  ;;  %s3831_s27 = smov [#allocation5]   ;;  %s3737_s9 = scalar_lea.hbm %s4564_s5, 32 }
   0x3   :  { %s41_s28 = sshll.u32 %s3831_s27, 4  ;;  %p3738_p0 = scmp.ne.s32.totalorder %s4564_s5, %s3737_s9  ;;  %s42_s28 = int_to_ptr.vmem [resolvable:$true] %s41_s28 }
   0x4   :  { %p3741_p1 = scmp.lt.u32.totalorder %s3737_s9, %s4564_s5 }
   0x6   :  { %p3743_p2 = pnand %p3741_p1, %p3738_p0 }
   0x8   :  { %3746 = shalt.err (!%p3743_p2)
}
   0x9   :  { %s3747_s14 = scalar_lea.vmem %s42_s28, 32  ;;  %p3752_p4 = scmp.lt.s32.totalorder %s42_s28, %s42_s28 }
   0xa   :  { %p3748_p3 = scmp.ne.s32.totalorder %s42_s28, %s3747_s14  ;;  %p3753_p5 = scmp.lt.s32.totalorder %s3747_s14, %s3747_s14 }
   0xc   :  { %p3754_p6 = por %p3753_p5, %p3752_p4 }
   0xe   :  { %p3755_p7 = pnand %p3754_p6, %p3748_p3 }
  0x10   :  { %3758 = shalt.err (!%p3755_p7)
}
  0x11   :  { %s3832_s15 = smov 16   ;;  %s3833_s16 = smov 1  }
  0x12   :  { %47 = dma.hbm_to_vmem [thread:$0]  %s4564_s5, 32, %s42_s28, [#allocation6], %s3832_s15, %s3832_s15, %s3833_s16  }
  0x13   :  { %s3834_s19 = smov [#allocation2]   ;;  %s3759_s23 = scalar_lea.hbm %s4559_s0, 256 }
  0x14   :  { %s21_s20 = sshll.u32 %s3834_s19, 4  ;;  %p3760_p8 = scmp.ne.s32.totalorder %s4559_s0, %s3759_s23  ;;  %s22_s20 = int_to_ptr.vmem [resolvable:$true] %s21_s20 }
  0x15   :  { %p3763_p9 = scmp.lt.u32.totalorder %s3759_s23, %s4559_s0 }
  0x17   :  { %p3765_p10 = pnand %p3763_p9, %p3760_p8 }
  0x19   :  { %3768 = shalt.err (!%p3765_p10)
}
  0x1a   :  { %s3769_s29 = scalar_lea.vmem %s22_s20, 256  ;;  %p3774_p12 = scmp.lt.s32.totalorder %s22_s20, %s22_s20 }
  0x1b   :  { %p3770_p11 = scmp.ne.s32.totalorder %s22_s20, %s3769_s29  ;;  %p3775_p13 = scmp.lt.s32.totalorder %s3769_s29, %s3769_s29 }
  0x1d   :  { %p3776_p0 = por %p3775_p13, %p3774_p12 }
  0x1f   :  { %p3777_p1 = pnand %p3776_p0, %p3770_p11 }
  0x21   :  { %3780 = shalt.err (!%p3777_p1)
}
  0x22   :  { %s3835_s5 = smov 128   ;;  %s3836_s28 = smov 8  }
  0x23   :  { %27 = dma.hbm_to_vmem [thread:$0]  %s4559_s0, 256, %s22_s20, [#allocation3], %s3835_s5, %s3835_s5, %s3836_s28  }
  0x24   :  { %s3837_s10 = smov [#allocation7]   ;;  %s3781_s14 = scalar_lea.hbm %s4566_s7, 256 }
  0x25   :  { %s55_s11 = sshll.u32 %s3837_s10, 4  ;;  %p3782_p2 = scmp.ne.s32.totalorder %s4566_s7, %s3781_s14  ;;  %s56_s11 = int_to_ptr.vmem [resolvable:$true] %s55_s11 }
  0x26   :  { %p3785_p3 = scmp.lt.u32.totalorder %s3781_s14, %s4566_s7 }
  0x28   :  { %p3787_p4 = pnand %p3785_p3, %p3782_p2 }
  0x2a   :  { %3790 = shalt.err (!%p3787_p4)
}
  0x2b   :  { %s3791_s19 = scalar_lea.vmem %s56_s11, 256  ;;  %p3796_p6 = scmp.lt.s32.totalorder %s56_s11, %s56_s11 }
  0x2c   :  { %p3792_p5 = scmp.ne.s32.totalorder %s56_s11, %s3791_s19  ;;  %p3797_p7 = scmp.lt.s32.totalorder %s3791_s19, %s3791_s19 }
  0x2e   :  { %p3798_p8 = por %p3797_p7, %p3796_p6 }
  0x30   :  { %p3799_p9 = pnand %p3798_p8, %p3792_p5 }
  0x32   :  { %3802 = shalt.err (!%p3799_p9)
}
  0x33   :  { %61 = dma.hbm_to_vmem [thread:$0]  %s4566_s7, 256, %s56_s11, [#allocation6], %s3835_s5, %s3835_s5, %s3836_s28  }
  0x34   :  { %3825 = dma.done.wait [#allocation3], 256  }
  0x35   :  { %3826 = vsyncadd [#allocation3], 4294967040 }
  0x36   :  { %3827 = dma.done.wait [#allocation6], 288  }
  0x37   :  { %3828 = vsyncadd [#allocation6], 4294967008  ;;  %vm76_vm0 = vcmask 261120   ;;  %v3933_v0 = vld [vmem:[#allocation2] sm:$0xff]  ;;  %v3935_v1 = vld [vmem:[#allocation2 + $0x8] sm:$0xff]  ;;  %v3838_v15 = vmov 0.0  }
  0x38   :  { %v77_v2 = vsel %vm76_vm0, %v3933_v0, 0.0  ;;  %v80_v3 = vsel %vm76_vm0, %v3935_v1, 0.0  ;;  %v3617_v14 = vld [vmem:[%s4560_s1] sm:$0xff]   ;;  %3276 = vmatprep.subr.bf16.mxu1 %v3838_v15  ;;  %vm3839_vm1 = vmmov 0   ;;  %v3618_v16 = vld [vmem:[%s4560_s1 + $0x8] sm:$0xff]   ;;  %3290 = vmatprep.subr.bf16.mxu0 %v3838_v15  ;;  %s3840_s26 = smov 112  }
  0x39   :  { %78 = vadd.xlane.f32.xlu0 %v77_v2  ;;  %3280 = vmatprep.mubr.msk.bf16.mxu1 %vm3839_vm1, %v3838_v15  ;;  %v3073_v35 = vld [vmem:[#allocation7] ss:$0 sm:$0xff]  ;;  %v3074_v39 = vld [vmem:[#allocation7 + $0x1] ss:$0 sm:$0xff]  ;;  %v3075_v44 = vld [vmem:[%s4561_s2] ss:$0 sm:$0xff] }
  0x3a   :  { %3277 = vmatpush3.bf16.msra.mxu1 %v3617_v14  ;;  %3292 = vmatprep.mubr.msk.bf16.mxu0 %vm3839_vm1, %v3838_v15  ;;  %s3841_s27 = smov 120   ;;  %s3842_s29 = smov 104   ;;  %vm229_vm6 = vcmask 64512   ;;  %vm728_vm7 = vcmask 1043456   ;;  %vm1489_vm12 = vcmask 523264  }
  0x3b   :  { %3278 = vmatprep.subr.bf16.mxu1 %v3838_v15  ;;  %s3843_s30 = smov 96   ;;  %s3844_s9 = smov 64  }
  0x3d   :  { %81 = vadd.xlane.f32.xlu0 %v80_v3 }
  0x3e   :  { %3279 = vmatpush3.bf16.msra.mxu1 %v3618_v16 }
  0x3f   :  { %3284 = vmatprep.subr.bf16.mxu1 %v3838_v15 }
  0xc6   :  { %v79_v4 = vpop.xlane.xlu0 %78 }
  0xc7   :  { %v84_v5 = vmul.f32 0.03125, %v79_v4 }
  0xc9   :  { %v86_v6 = vsub.f32 %v3933_v0, %v84_v5 }
  0xca   :  { %v82_v7 = vpop.xlane.xlu0 %81 }
  0xcb   :  { %v85_v8 = vmul.f32 0.03125, %v82_v7  ;;  %v88_v9 = vmul.f32 %v86_v6, %v86_v6 }
  0xcd   :  { %v87_v10 = vsub.f32 %v3935_v1, %v85_v8  ;;  %v90_v11 = vsel %vm76_vm0, %v88_v9, 0.0 }
  0xce   :  { %91 = vadd.xlane.f32.xlu1 %v90_v11 }
  0xcf   :  { %v89_v12 = vmul.f32 %v87_v10, %v87_v10 }
  0xd1   :  { %v93_v13 = vsel %vm76_vm0, %v89_v12, 0.0 }
  0xd2   :  { %94 = vadd.xlane.f32.xlu1 %v93_v13 }
 0x15b   :  { %v92_v17 = vpop.xlane.xlu1 %91 }
 0x15c   :  { %v96_v18 = vmul.f32 0.032258064, %v92_v17 }
 0x15e   :  { %3633 = vrsqrt.f32 %v96_v18  ;;  %vm100_vm2 = vcmp.eq.f32.partialorder %v96_v18, inf  ;;  %v103_v23 = vand.u32 2147483648, %v96_v18  ;;  %vm102_vm3 = vcmp.eq.f32.partialorder %v96_v18, 0.0 }
 0x15f   :  { %v95_v19 = vpop.xlane.xlu1 %94 }
 0x160   :  { %v97_v20 = vmul.f32 0.032258064, %v95_v19 }
 0x162   :  { %3635 = vrsqrt.f32 %v97_v20  ;;  %vm107_vm4 = vcmp.eq.f32.partialorder %v97_v20, inf  ;;  %v110_v29 = vand.u32 2147483648, %v97_v20  ;;  %vm109_vm5 = vcmp.eq.f32.partialorder %v97_v20, 0.0 }
 0x168   :  { %v3634_v21 = vpop.eup %3633 }
 0x169   :  { %v99_v22 = vmul.f32 %v3634_v21, %v96_v18 }
 0x16b   :  { %v101_v24 = vsel %vm100_vm2, %v96_v18, %v99_v22 }
 0x16c   :  { %v3636_v25 = vpop.eup %3635  ;;  %v104_v26 = vsel %vm102_vm3, %v103_v23, %v101_v24 }
 0x16d   :  { %v112_v27 = vadd.f32 1e-06, %v104_v26  ;;  %v106_v28 = vmul.f32 %v3636_v25, %v97_v20 }
 0x16f   :  { %3637 = vrcp.f32 %v112_v27  ;;  %v108_v30 = vsel %vm107_vm4, %v97_v20, %v106_v28 }
 0x170   :  { %v111_v31 = vsel %vm109_vm5, %v110_v29, %v108_v30 }
 0x171   :  { %v113_v32 = vadd.f32 1e-06, %v111_v31 }
 0x173   :  { %3639 = vrcp.f32 %v113_v32 }
 0x179   :  { %v3638_v33 = vpop.eup %3637 }
 0x17a   :  { %v116_v34 = vmul.f32 %v3638_v33, %v86_v6 }
 0x17c   :  { %v122_v38 = vmul.f32 %v3073_v35, %v116_v34 }
 0x17d   :  { %v3640_v36 = vpop.eup %3639 }
 0x17e   :  { %v117_v37 = vmul.f32 %v3640_v36, %v87_v10  ;;  %v128_v41 = vadd.f32 %v3074_v39, %v122_v38 }
 0x180   :  { %v123_v40 = vmul.f32 %v3073_v35, %v117_v37 }
 0x182   :  { %v129_v42 = vadd.f32 %v3074_v39, %v123_v40 }
 0x184   :  { %v130_v43 = vpack.c.bf16 %v129_v42, %v128_v41 }
 0x186   :  { %3281 = vmatmul.mubr.msk.bf16.vlgmr.msra.gmra.mrb[0].mxu1 %vm76_vm0, %v130_v43 }
 0x187   :  { %3286 = vmatprep.mubr.msk.bf16.mxu1 %vm3839_vm1, %v3838_v15 }
 0x259   :  { %v191_v45 = vpop.f32.mrb[0].mxu1 }
 0x25a   :  { %v3282_v46 = vpop.f32.mrb[1].mxu1  ;;  %v192_v48 = vadd.f32 %v3075_v44, %v191_v45 }
 0x25b   :  { %v194_v47 = vpop.f32.mrb[2].mxu1 }
 0x25c   :  { %v195_v49 = vadd.f32 %v3075_v44, %v194_v47  ;;  %v3283_v50 = vpop.f32.mrb[3].mxu1  ;;  %v218_v53 = vpack.c.bf16 %v192_v48, %v192_v48 }
 0x25e   :  { %v3592_v51 = vpack.i.bf16 %v195_v49, %v192_v48  ;;  %v3967_v52 = vpack.c.bf16 %v195_v49, %v195_v49 }
 0x260   :  { %3593 = vrot.lane.b32.xlu1 %v3592_v51, %s3840_s26  ;;  %3588 = vrot.lane.b32.xlu0 %v3592_v51, %s3841_s27 }
 0x264   :  { %3598 = vrot.lane.b32.xlu1 %v3592_v51, %s3842_s29  ;;  %277 = vrot.lane.b32.xlu0 %v3967_v52, %s3843_s30 }
 0x268   :  { %227 = vrot.lane.b32.xlu1 %v218_v53, %s3843_s30 }
 0x2d2   :  { %v3594_v54 = vpop.permute.xlu1 %3593  ;;  %v3589_v55 = vpop.permute.xlu0 %3588 }
 0x2d3   :  { %v3591_v56 = vunpack.i.h.bf16 %v3589_v55  ;;  %v3590_v57 = vunpack.i.l.bf16 %v3589_v55  ;;  %v3596_v58 = vunpack.i.h.bf16 %v3594_v54  ;;  %v3595_v59 = vunpack.i.l.bf16 %v3594_v54 }
 0x2d5   :  { %v3973_v60 = vpack.c.bf16 %v3591_v56, %v3591_v56  ;;  %v3975_v61 = vpack.c.bf16 %v3590_v57, %v3590_v57  ;;  %v3982_v3 = vpack.c.bf16 %v3596_v58, %v3596_v58  ;;  %v3984_v4 = vpack.c.bf16 %v3595_v59, %v3595_v59 }
 0x2d6   :  { %v3599_v62 = vpop.permute.xlu1 %3598  ;;  %v278_v63 = vpop.permute.xlu0 %277 }
 0x2d7   :  { %326 = vrot.lane.b32.xlu1 %v3975_v61, %s3843_s30  ;;  %375 = vrot.lane.b32.xlu0 %v3973_v60, %s3843_s30  ;;  %v283_v2 = vsel %vm229_vm6, %v278_v63, 0  ;;  %v3601_v5 = vunpack.i.h.bf16 %v3599_v62  ;;  %v3600_v6 = vunpack.i.l.bf16 %v3599_v62 }
 0x2d8   :  { %3291 = vmatpush3.bf16.xpose.msra.mxu0 %v283_v2 }
 0x2d9   :  { %3302 = vmatprep.subr.bf16.mxu0 %v3838_v15  ;;  %v3992_v9 = vpack.c.bf16 %v3601_v5, %v3601_v5  ;;  %v3994_v10 = vpack.c.bf16 %v3600_v6, %v3600_v6 }
 0x2da   :  { %v228_v7 = vpop.permute.xlu1 %227 }
 0x2db   :  { %v234_v8 = vsel %vm229_vm6, %v228_v7, 0  ;;  %424 = vrot.lane.b32.xlu1 %v3984_v4, %s3843_s30  ;;  %473 = vrot.lane.b32.xlu0 %v3982_v3, %s3843_s30 }
 0x2dc   :  { %3285 = vmatpush3.bf16.xpose.msra.mxu1 %v234_v8 }
 0x2dd   :  { %3296 = vmatprep.subr.bf16.mxu1 %v3838_v15 }
 0x2df   :  { %522 = vrot.lane.b32.xlu1 %v3994_v10, %s3843_s30  ;;  %571 = vrot.lane.b32.xlu0 %v3992_v9, %s3843_s30 }
 0x2e0   :  { %3293 = vmatmul.mubr.msk.bf16.vlgmr.msra.gmra.mrb[0].mxu0 %vm229_vm6, %v3967_v52 }
 0x2e1   :  { %3304 = vmatprep.mubr.msk.bf16.mxu0 %vm3839_vm1, %v3838_v15 }
 0x2e3   :  { %3287 = vmatmul.mubr.msk.bf16.vlgmr.msra.gmra.mrb[4].mxu1 %vm229_vm6, %v218_v53  ;;  %723 = vrot.lane.b32.xlu1 %v218_v53, %s3844_s9 }
 0x2e4   :  { %3298 = vmatprep.mubr.msk.bf16.mxu1 %vm3839_vm1, %v3838_v15 }
 0x349   :  { %v327_v11 = vpop.permute.xlu1 %326  ;;  %v376_v12 = vpop.permute.xlu0 %375 }
 0x34a   :  { %v332_v13 = vsel %vm229_vm6, %v327_v11, 0  ;;  %v381_v14 = vsel %vm229_vm6, %v376_v12, 0 }
 0x34b   :  { %3297 = vmatpush3.bf16.xpose.msra.mxu1 %v332_v13  ;;  %3303 = vmatpush3.bf16.xpose.msra.mxu0 %v381_v14 }
 0x34c   :  { %3308 = vmatprep.subr.bf16.mxu1 %v3838_v15  ;;  %3314 = vmatprep.subr.bf16.mxu0 %v3838_v15 }
 0x34d   :  { %v425_v16 = vpop.permute.xlu1 %424  ;;  %v474_v17 = vpop.permute.xlu0 %473 }
 0x34e   :  { %v430_v18 = vsel %vm229_vm6, %v425_v16, 0  ;;  %v479_v19 = vsel %vm229_vm6, %v474_v17, 0 }
 0x351   :  { %v523_v20 = vpop.permute.xlu1 %522  ;;  %v572_v21 = vpop.permute.xlu0 %571 }
 0x352   :  { %3299 = vmatmul.mubr.msk.bf16.vlgmr.msra.gmra.mrb[8].mxu1 %vm229_vm6, %v3975_v61  ;;  %3305 = vmatmul.mubr.msk.bf16.vlgmr.msra.gmra.mrb[4].mxu0 %vm229_vm6, %v3973_v60  ;;  %v528_v22 = vsel %vm229_vm6, %v523_v20, 0  ;;  %v577_v23 = vsel %vm229_vm6, %v572_v21, 0 }
 0x353   :  { %3309 = vmatpush3.bf16.xpose.msra.mxu1 %v430_v18  ;;  %3315 = vmatpush3.bf16.xpose.msra.mxu0 %v479_v19 }
 0x354   :  { %3310 = vmatprep.mubr.msk.bf16.mxu1 %vm3839_vm1, %v3838_v15  ;;  %3316 = vmatprep.mubr.msk.bf16.mxu0 %vm3839_vm1, %v3838_v15 }
 0x355   :  { %3320 = vmatprep.subr.bf16.mxu1 %v3838_v15  ;;  %3326 = vmatprep.subr.bf16.mxu0 %v3838_v15  ;;  %v724_v24 = vpop.permute.xlu1 %723 }
 0x356   :  { %v730_v25 = vsel %vm728_vm7, %v724_v24, 0 }
 0x35a   :  { %3311 = vmatmul.mubr.msk.bf16.vlgmr.msra.gmra.mrb[12].mxu1 %vm229_vm6, %v3984_v4  ;;  %3317 = vmatmul.mubr.msk.bf16.vlgmr.msra.gmra.mrb[8].mxu0 %vm229_vm6, %v3982_v3 }
 0x35b   :  { %3321 = vmatpush3.bf16.xpose.msra.mxu1 %v528_v22  ;;  %3327 = vmatpush3.bf16.xpose.msra.mxu0 %v577_v23 }
 0x35c   :  { %3322 = vmatprep.mubr.msk.bf16.mxu1 %vm3839_vm1, %v3838_v15  ;;  %3328 = vmatprep.mubr.msk.bf16.mxu0 %vm3839_vm1, %v3838_v15 }
 0x35d   :  { %3332 = vmatprep.subr.bf16.mxu1 %v3838_v15  ;;  %3338 = vmatprep.subr.bf16.mxu0 %v3838_v15 }
 0x362   :  { %3323 = vmatmul.mubr.msk.bf16.vlgmr.msra.gmra.mrb[16].mxu1 %vm229_vm6, %v3994_v10  ;;  %3329 = vmatmul.mubr.msk.bf16.vlgmr.msra.gmra.mrb[12].mxu0 %vm229_vm6, %v3992_v9 }
 0x363   :  { %3333 = vmatpush3.bf16.msra.mxu1 %v730_v25  ;;  %3340 = vmatprep.mubr.msk.bf16.mxu0 %vm3839_vm1, %v3838_v15 }
 0x364   :  { %3334 = vmatprep.mubr.msk.bf16.mxu1 %vm3839_vm1, %v3838_v15  ;;  %3344 = vmatprep.subr.bf16.mxu1 %v3838_v15 }
 0x3b3   :  { %v319_v26 = vpop.f32.mrb[0].mxu0 }
 0x3b4   :  { %v620_v27 = vmul.f32 0.35355338, %v319_v26  ;;  %v3294_v28 = vpop.f32.mrb[1].mxu0 }
 0x3b5   :  { %v322_v29 = vpop.f32.mrb[2].mxu0 }
 0x3b6   :  { %v3295_v30 = vpop.f32.mrb[3].mxu0  ;;  %v630_v31 = vsel %vm229_vm6, %v620_v27, -inf  ;;  %v270_v32 = vpop.f32.mrb[4].mxu1 }
 0x3b7   :  { %631 = vmax.xlane.f32.xlu0 %v630_v31  ;;  %v619_v33 = vmul.f32 0.35355338, %v270_v32  ;;  %v3288_v34 = vpop.f32.mrb[5].mxu1 }
 0x3b8   :  { %v273_v35 = vpop.f32.mrb[6].mxu1 }
 0x3b9   :  { %v3289_v36 = vpop.f32.mrb[7].mxu1  ;;  %v627_v37 = vsel %vm229_vm6, %v619_v33, -inf }
 0x3ba   :  { %628 = vmax.xlane.f32.xlu1 %v627_v37 }
 0x425   :  { %v368_v38 = vpop.f32.mrb[8].mxu1  ;;  %v417_v39 = vpop.f32.mrb[4].mxu0 }
 0x426   :  { %v621_v40 = vmul.f32 0.35355338, %v368_v38  ;;  %v3300_v41 = vpop.f32.mrb[9].mxu1  ;;  %v3306_v42 = vpop.f32.mrb[5].mxu0  ;;  %v622_v45 = vmul.f32 0.35355338, %v417_v39 }
 0x427   :  { %v371_v43 = vpop.f32.mrb[10].mxu1  ;;  %v420_v44 = vpop.f32.mrb[6].mxu0 }
 0x428   :  { %v3301_v46 = vpop.f32.mrb[11].mxu1  ;;  %v3307_v47 = vpop.f32.mrb[7].mxu0  ;;  %v633_v48 = vsel %vm229_vm6, %v621_v40, -inf  ;;  %v636_v49 = vsel %vm229_vm6, %v622_v45, -inf }
 0x429   :  { %634 = vmax.xlane.f32.xlu0 %v633_v48 }
 0x42d   :  { %v515_v50 = vpop.f32.mrb[8].mxu0  ;;  %637 = vmax.xlane.f32.xlu0 %v636_v49  ;;  %v466_v51 = vpop.f32.mrb[12].mxu1 }
 0x42e   :  { %v4051_v53 = vmul.f32 0.35355338, %v515_v50  ;;  %v623_v54 = vmul.f32 0.35355338, %v466_v51  ;;  %v3312_v55 = vpop.f32.mrb[13].mxu1  ;;  %v3318_v56 = vpop.f32.mrb[9].mxu0 }
 0x42f   :  { %v469_v57 = vpop.f32.mrb[14].mxu1  ;;  %v518_v58 = vpop.f32.mrb[10].mxu0 }
 0x430   :  { %v3313_v59 = vpop.f32.mrb[15].mxu1  ;;  %v3319_v62 = vpop.f32.mrb[11].mxu0  ;;  %v642_v63 = vsel %vm229_vm6, %v4051_v53, -inf  ;;  %v639_v2 = vsel %vm229_vm6, %v623_v54, -inf }
 0x431   :  { %643 = vmax.xlane.f32.xlu0 %v642_v63  ;;  %640 = vmax.xlane.f32.xlu1 %v639_v2 }
 0x435   :  { %v564_v5 = vpop.f32.mrb[16].mxu1  ;;  %v613_v6 = vpop.f32.mrb[12].mxu0 }
 0x436   :  { %v625_v7 = vmul.f32 0.35355338, %v564_v5  ;;  %v4056_v8 = vmul.f32 0.35355338, %v613_v6  ;;  %v3324_v11 = vpop.f32.mrb[17].mxu1  ;;  %v3330_v12 = vpop.f32.mrb[13].mxu0 }
 0x437   :  { %v567_v13 = vpop.f32.mrb[18].mxu1  ;;  %v616_v14 = vpop.f32.mrb[14].mxu0 }
 0x438   :  { %v3325_v16 = vpop.f32.mrb[19].mxu1  ;;  %v3331_v17 = vpop.f32.mrb[15].mxu0  ;;  %v648_v18 = vsel %vm229_vm6, %v4056_v8, -inf  ;;  %v645_v19 = vsel %vm229_vm6, %v625_v7, -inf }
 0x439   :  { %649 = vmax.xlane.f32.xlu0 %v648_v18  ;;  %646 = vmax.xlane.f32.xlu1 %v645_v19 }
 0x444   :  { %v632_v20 = vpop.xlane.xlu0 %631 }
 0x445   :  { %v652_v21 = vsub.f32 %v620_v27, %v632_v20 }
 0x447   :  { %v629_v22 = vpop.xlane.xlu1 %628  ;;  %v661_v23 = vmul.f32 1.442695, %v652_v21 }
 0x448   :  { %v651_v24 = vsub.f32 %v619_v33, %v629_v22 }
 0x449   :  { %3641 = vpow2.f32 %v661_v23 }
 0x44a   :  { %820 = vrot.lane.b32.xlu1 %v3975_v61, %s3844_s9  ;;  %v659_v25 = vmul.f32 1.442695, %v651_v24 }
 0x44c   :  { %3643 = vpow2.f32 %v659_v25 }
 0x44e   :  { %868 = vrot.lane.b32.xlu1 %v3973_v60, %s3844_s9 }
 0x44f   :  { %772 = vrot.lane.b32.xlu0 %v3967_v52, %s3844_s9 }
 0x453   :  { %v3642_v26 = vpop.eup %3641 }
 0x454   :  { %v678_v28 = vsel %vm229_vm6, %v3642_v26, 0.0 }
 0x456   :  { %v4068_v29 = vpop.eup %3643 }
 0x457   :  { %v675_v60 = vsel %vm229_vm6, %v4068_v29, 0.0 }
 0x46e   :  { %679 = vadd.xlane.f32.xlu0 %v678_v28 }
 0x472   :  { %676 = vadd.xlane.f32.xlu1 %v675_v60 }
 0x483   :  { %916 = vrot.lane.b32.xlu1 %v3984_v4, %s3844_s9 }
 0x4b6   :  { %v635_v52 = vpop.xlane.xlu0 %634 }
 0x4b7   :  { %v653_v61 = vsub.f32 %v621_v40, %v635_v52 }
 0x4b9   :  { %v663_v27 = vmul.f32 1.442695, %v653_v61 }
 0x4ba   :  { %v638_v30 = vpop.xlane.xlu0 %637 }
 0x4bb   :  { %3645 = vpow2.f32 %v663_v27  ;;  %v654_v31 = vsub.f32 %v622_v45, %v638_v30  ;;  %v1112_v30 = vld [vmem:[%s4562_s3] sm:$0xf] }
 0x4bd   :  { %v665_v32 = vmul.f32 1.442695, %v654_v31 }
 0x4be   :  { %v641_v33 = vpop.xlane.xlu1 %640  ;;  %v644_v36 = vpop.xlane.xlu0 %643 }
 0x4bf   :  { %3647 = vpow2.f32 %v665_v32  ;;  %v655_v34 = vsub.f32 %v623_v54, %v641_v33  ;;  %v656_v50 = vsub.f32 %v4051_v53, %v644_v36  ;;  %v1120_v33 = vsel %vm728_vm7, %v1112_v30, 0 }
 0x4c1   :  { %v667_v35 = vmul.f32 1.442695, %v655_v34  ;;  %v669_v51 = vmul.f32 1.442695, %v656_v50 }
 0x4c3   :  { %3649 = vpow2.f32 %v667_v35 }
 0x4c5   :  { %v4074_v37 = vpop.eup %3645 }
 0x4c6   :  { %v650_v38 = vpop.xlane.xlu0 %649  ;;  %v647_v39 = vpop.xlane.xlu1 %646  ;;  %v681_v4 = vsel %vm229_vm6, %v4074_v37, 0.0 }
 0x4c7   :  { %v657_v41 = vsub.f32 %v625_v7, %v647_v39  ;;  %682 = vadd.xlane.f32.xlu1 %v681_v4  ;;  %v658_v54 = vsub.f32 %v4056_v8, %v650_v38 }
 0x4c9   :  { %v4078_v40 = vpop.eup %3647  ;;  %v671_v42 = vmul.f32 1.442695, %v657_v41  ;;  %v673_v55 = vmul.f32 1.442695, %v658_v54 }
 0x4ca   :  { %v773_v43 = vpop.permute.xlu0 %772  ;;  %v684_v44 = vsel %vm229_vm6, %v4078_v40, 0.0  ;;  %v821_v56 = vpop.permute.xlu1 %820 }
 0x4cb   :  { %v778_v45 = vsel %vm728_vm7, %v773_v43, 0  ;;  %685 = vadd.xlane.f32.xlu0 %v684_v44  ;;  %3651 = vpow2.f32 %v671_v42  ;;  %v826_v12 = vsel %vm728_vm7, %v821_v56, 0  ;;  %v1113_v43 = vld [vmem:[%s4562_s3 + $0x4] sm:$0xf]  ;;  %v1114_v56 = vld [vmem:[%s4562_s3 + $0x8] sm:$0xf] }
 0x4cc   :  { %3339 = vmatpush3.bf16.msra.mxu0 %v778_v45  ;;  %3653 = vpow2.f32 %v669_v51  ;;  %v1167_v44 = vsel %vm728_vm7, %v1113_v43, 0 }
 0x4cd   :  { %3350 = vmatprep.subr.bf16.mxu0 %v3838_v15  ;;  %v4084_v46 = vpop.eup %3649  ;;  %3655 = vpow2.f32 %v673_v55 }
 0x4ce   :  { %v687_v47 = vsel %vm229_vm6, %v4084_v46, 0.0  ;;  %v869_v57 = vpop.permute.xlu1 %868 }
 0x4cf   :  { %688 = vadd.xlane.f32.xlu1 %v687_v47  ;;  %v874_v7 = vsel %vm728_vm7, %v869_v57, 0  ;;  %v1214_v57 = vsel %vm728_vm7, %v1114_v56, 0 }
 0x4d5   :  { %v4088_v48 = vpop.eup %3651 }
 0x4d6   :  { %v693_v49 = vsel %vm229_vm6, %v4088_v48, 0.0  ;;  %v4098_v59 = vpop.eup %3653 }
 0x4d7   :  { %694 = vadd.xlane.f32.xlu1 %v693_v49  ;;  %v4102_v63 = vpop.eup %3655 }
 0x4e1   :  { %964 = vrot.lane.b32.xlu0 %v3982_v3, %s3844_s9  ;;  %v690_v3 = vsel %vm229_vm6, %v4098_v59, 0.0 }
 0x4e8   :  { %1012 = vrot.lane.b32.xlu1 %v3994_v10, %s3844_s9  ;;  %v696_v10 = vsel %vm229_vm6, %v4102_v63, 0.0 }
 0x4fb   :  { %v680_v58 = vpop.xlane.xlu0 %679 }
 0x4fc   :  { %3657 = vrcp.f32 %v680_v58 }
 0x4ff   :  { %v677_v62 = vpop.xlane.xlu1 %676 }
 0x500   :  { %3659 = vrcp.f32 %v677_v62  ;;  %691 = vadd.xlane.f32.xlu0 %v690_v3  ;;  %v1115_v3 = vld [vmem:[%s4562_s3 + $0xc] sm:$0xf] }
 0x503   :  { %v917_v13 = vpop.permute.xlu1 %916 }
 0x504   :  { %697 = vadd.xlane.f32.xlu0 %v696_v10  ;;  %v922_v22 = vsel %vm728_vm7, %v917_v13, 0 }
 0x506   :  { %v3658_v53 = vpop.eup %3657 }
 0x507   :  { %v708_v2 = vmul.f32 %v3658_v53, %v3642_v26 }
 0x509   :  { %v716_v5 = vpack.c.bf16 %v708_v2, %v708_v2 }
 0x50a   :  { %v3660_v6 = vpop.eup %3659 }
 0x50b   :  { %v707_v8 = vmul.f32 %v3660_v6, %v4068_v29  ;;  %3341 = vmatmul.mubr.msk.bf16.vlgmr.msra.gmra.mrb[16].mxu0 %vm229_vm6, %v716_v5  ;;  %v1261_v5 = vsel %vm728_vm7, %v1115_v3, 0 }
 0x50c   :  { %3351 = vmatpush3.bf16.msra.mxu0 %v874_v7  ;;  %3352 = vmatprep.mubr.msk.bf16.mxu0 %vm3839_vm1, %v3838_v15 }
 0x50d   :  { %v715_v11 = vpack.c.bf16 %v707_v8, %v707_v8  ;;  %3362 = vmatprep.subr.bf16.mxu0 %v3838_v15 }
 0x50f   :  { %3335 = vmatmul.mubr.msk.bf16.vlgmr.msra.gmra.mrb[20].mxu1 %vm229_vm6, %v715_v11 }
 0x510   :  { %3345 = vmatpush3.bf16.msra.mxu1 %v826_v12  ;;  %3346 = vmatprep.mubr.msk.bf16.mxu1 %vm3839_vm1, %v3838_v15 }
 0x511   :  { %3356 = vmatprep.subr.bf16.mxu1 %v3838_v15 }
 0x51a   :  { %1060 = vrot.lane.b32.xlu0 %v3992_v9, %s3844_s9 }
 0x554   :  { %v683_v14 = vpop.xlane.xlu1 %682 }
 0x555   :  { %3661 = vrcp.f32 %v683_v14 }
 0x558   :  { %v686_v16 = vpop.xlane.xlu0 %685 }
 0x559   :  { %3663 = vrcp.f32 %v686_v16 }
 0x55c   :  { %v689_v17 = vpop.xlane.xlu1 %688  ;;  %v965_v24 = vpop.permute.xlu0 %964 }
 0x55d   :  { %3665 = vrcp.f32 %v689_v17  ;;  %v970_v28 = vsel %vm728_vm7, %v965_v24, 0 }
 0x55f   :  { %v3662_v18 = vpop.eup %3661 }
 0x560   :  { %v709_v19 = vmul.f32 %v3662_v18, %v4074_v37 }
 0x562   :  { %v717_v20 = vpack.c.bf16 %v709_v19, %v709_v19 }
 0x563   :  { %v3664_v21 = vpop.eup %3663 }
 0x564   :  { %v710_v23 = vmul.f32 %v3664_v21, %v4078_v40  ;;  %3347 = vmatmul.mubr.msk.bf16.vlgmr.msra.gmra.mrb[24].mxu1 %vm229_vm6, %v717_v20  ;;  %v695_v9 = vpop.xlane.xlu1 %694 }
 0x565   :  { %3357 = vmatpush3.bf16.msra.mxu1 %v922_v22  ;;  %3358 = vmatprep.mubr.msk.bf16.mxu1 %vm3839_vm1, %v3838_v15  ;;  %3667 = vrcp.f32 %v695_v9 }
 0x566   :  { %v718_v25 = vpack.c.bf16 %v710_v23, %v710_v23  ;;  %3368 = vmatprep.subr.bf16.mxu1 %v3838_v15 }
 0x567   :  { %v3666_v26 = vpop.eup %3665 }
 0x568   :  { %3353 = vmatmul.mubr.msk.bf16.vlgmr.msra.gmra.mrb[20].mxu0 %vm229_vm6, %v718_v25  ;;  %v711_v29 = vmul.f32 %v3666_v26, %v4084_v46  ;;  %v1013_v60 = vpop.permute.xlu1 %1012 }
 0x569   :  { %3363 = vmatpush3.bf16.msra.mxu0 %v970_v28  ;;  %3364 = vmatprep.mubr.msk.bf16.mxu0 %vm3839_vm1, %v3838_v15  ;;  %v1018_v61 = vsel %vm728_vm7, %v1013_v60, 0 }
 0x56a   :  { %3374 = vmatprep.subr.bf16.mxu0 %v3838_v15  ;;  %v719_v52 = vpack.c.bf16 %v711_v29, %v711_v29 }
 0x56c   :  { %3359 = vmatmul.mubr.msk.bf16.vlgmr.msra.gmra.mrb[28].mxu1 %vm229_vm6, %v719_v52 }
 0x56d   :  { %3369 = vmatpush3.bf16.msra.mxu1 %v1018_v61  ;;  %3370 = vmatprep.mubr.msk.bf16.mxu1 %vm3839_vm1, %v3838_v15 }
 0x56e   :  { %3380 = vmatprep.subr.bf16.mxu1 %v3838_v15 }
 0x56f   :  { %v3668_v27 = vpop.eup %3667 }
 0x570   :  { %v713_v31 = vmul.f32 %v3668_v27, %v4088_v48 }
 0x572   :  { %v721_v32 = vpack.c.bf16 %v713_v31, %v713_v31 }
 0x574   :  { %3371 = vmatmul.mubr.msk.bf16.vlgmr.msra.gmra.mrb[32].mxu1 %vm229_vm6, %v721_v32 }
 0x575   :  { %3381 = vmatpush3.bf16.msra.mxu1 %v1120_v33  ;;  %3382 = vmatprep.mubr.msk.bf16.mxu1 %vm3839_vm1, %v3838_v15 }
 0x576   :  { %3392 = vmatprep.subr.bf16.mxu1 %v3838_v15 }
 0x58d   :  { %v692_v34 = vpop.xlane.xlu0 %691 }
 0x58e   :  { %3669 = vrcp.f32 %v692_v34 }
 0x591   :  { %v698_v35 = vpop.xlane.xlu0 %697 }
 0x592   :  { %3671 = vrcp.f32 %v698_v35 }
 0x595   :  { %v1061_v38 = vpop.permute.xlu0 %1060 }
 0x596   :  { %v1066_v41 = vsel %vm728_vm7, %v1061_v38, 0 }
 0x598   :  { %v3670_v36 = vpop.eup %3669 }
 0x599   :  { %v712_v37 = vmul.f32 %v3670_v36, %v4098_v59 }
 0x59b   :  { %v720_v39 = vpack.c.bf16 %v712_v37, %v712_v37 }
 0x59c   :  { %v3672_v4 = vpop.eup %3671 }
 0x59d   :  { %3365 = vmatmul.mubr.msk.bf16.vlgmr.msra.gmra.mrb[24].mxu0 %vm229_vm6, %v720_v39  ;;  %v714_v40 = vmul.f32 %v3672_v4, %v4102_v63 }
 0x59e   :  { %3375 = vmatpush3.bf16.msra.mxu0 %v1066_v41  ;;  %3376 = vmatprep.mubr.msk.bf16.mxu0 %vm3839_vm1, %v3838_v15 }
 0x59f   :  { %3386 = vmatprep.subr.bf16.mxu0 %v3838_v15  ;;  %v722_v42 = vpack.c.bf16 %v714_v40, %v714_v40 }
 0x5a5   :  { %3377 = vmatmul.mubr.msk.bf16.vlgmr.msra.gmra.mrb[28].mxu0 %vm229_vm6, %v722_v42 }
 0x5a6   :  { %3388 = vmatprep.mubr.msk.bf16.mxu0 %vm3839_vm1, %v3838_v15  ;;  %3387 = vmatpush3.bf16.msra.mxu0 %v1167_v44 }
 0x5a7   :  { %3398 = vmatprep.subr.bf16.mxu0 %v3838_v15 }
 0x5de   :  { %v814_v45 = vpop.f32.mrb[16].mxu0 }
 0x5df   :  { %v3342_v46 = vpop.f32.mrb[17].mxu0 }
 0x5e0   :  { %v817_v47 = vpop.f32.mrb[18].mxu0 }
 0x5e1   :  { %v3343_v48 = vpop.f32.mrb[19].mxu0 }
 0x5e2   :  { %v766_v49 = vpop.f32.mrb[20].mxu1  ;;  %v3099_v48 = vld [vmem:[#allocation7 + $0x4] ss:$0 sm:$0xff] }
 0x5e3   :  { %v1108_v50 = vpack.c.bf16 %v814_v45, %v766_v49  ;;  %v3336_v51 = vpop.f32.mrb[21].mxu1 }
 0x5e4   :  { %v769_v54 = vpop.f32.mrb[22].mxu1 }
 0x5e5   :  { %v3337_v55 = vpop.f32.mrb[23].mxu1  ;;  %3383 = vmatmul.mubr.msk.bf16.vlgmr.msra.gmra.mrb[36].mxu1 %vm229_vm6, %v1108_v50 }
 0x5e6   :  { %3394 = vmatprep.mubr.msk.bf16.mxu1 %vm3839_vm1, %v3838_v15  ;;  %3393 = vmatpush3.bf16.msra.mxu1 %v1214_v57 }
 0x5e7   :  { %3404 = vmatprep.subr.bf16.mxu1 %v3838_v15 }
 0x637   :  { %v862_v58 = vpop.f32.mrb[24].mxu1 }
 0x638   :  { %v3348_v59 = vpop.f32.mrb[25].mxu1 }
 0x639   :  { %v865_v62 = vpop.f32.mrb[26].mxu1 }
 0x63a   :  { %v3349_v63 = vpop.f32.mrb[27].mxu1 }
 0x63b   :  { %v910_v10 = vpop.f32.mrb[20].mxu0 }
 0x63c   :  { %v1109_v53 = vpack.c.bf16 %v910_v10, %v862_v58  ;;  %v3354_v2 = vpop.f32.mrb[21].mxu0 }
 0x63d   :  { %v913_v6 = vpop.f32.mrb[22].mxu0 }
 0x63e   :  { %v3355_v7 = vpop.f32.mrb[23].mxu0  ;;  %3389 = vmatmul.mubr.msk.bf16.vlgmr.msra.gmra.mrb[32].mxu0 %vm229_vm6, %v1109_v53 }
 0x63f   :  { %3399 = vmatpush3.bf16.msra.mxu0 %v1261_v5  ;;  %3400 = vmatprep.mubr.msk.bf16.mxu0 %vm3839_vm1, %v3838_v15  ;;  %v958_v8 = vpop.f32.mrb[28].mxu1 }
 0x640   :  { %3412 = vmatprep.subr.bf16.mxu0 %v3838_v15  ;;  %v3360_v11 = vpop.f32.mrb[29].mxu1 }
 0x641   :  { %v961_v12 = vpop.f32.mrb[30].mxu1 }
 0x642   :  { %v3361_v13 = vpop.f32.mrb[31].mxu1  ;;  %v3619_v12 = vld [vmem:[%s4563_s4] sm:$0xff]  }
 0x643   :  { %v3620_v13 = vld [vmem:[%s4563_s4 + $0x8] sm:$0xff]  }
 0x647   :  { %v1054_v14 = vpop.f32.mrb[32].mxu1 }
 0x648   :  { %v3372_v16 = vpop.f32.mrb[33].mxu1 }
 0x649   :  { %v1057_v17 = vpop.f32.mrb[34].mxu1  ;;  %v3622_v16 = vld [vmem:[%s4565_s6 + $0x8] sm:$0xff]  }
 0x64a   :  { %v3373_v18 = vpop.f32.mrb[35].mxu1 }
 0x670   :  { %v1006_v19 = vpop.f32.mrb[24].mxu0 }
 0x671   :  { %v1110_v20 = vpack.c.bf16 %v1006_v19, %v958_v8  ;;  %v3366_v21 = vpop.f32.mrb[25].mxu0 }
 0x672   :  { %v1009_v22 = vpop.f32.mrb[26].mxu0 }
 0x673   :  { %v3367_v23 = vpop.f32.mrb[27].mxu0  ;;  %3395 = vmatmul.mubr.msk.bf16.vlgmr.msra.gmra.mrb[40].mxu1 %vm229_vm6, %v1110_v20 }
 0x674   :  { %3408 = vmatprep.mubr.msk.bf16.mxu1 %vm3839_vm1, %v3838_v15  ;;  %3405 = vmatpush3.bf16.msra.mxu1 %v3619_v12 }
 0x675   :  { %3406 = vmatprep.subr.bf16.mxu1 %v3838_v15 }
 0x678   :  { %v1102_v24 = vpop.f32.mrb[28].mxu0  ;;  %3407 = vmatpush3.bf16.msra.mxu1 %v3620_v13  ;;  %v3625_v13 = vld [vmem:[%s4560_s1 + $0x10] sm:$0xff]  }
 0x679   :  { %v1111_v9 = vpack.c.bf16 %v1102_v24, %v1054_v14  ;;  %v3378_v25 = vpop.f32.mrb[29].mxu0  ;;  %3424 = vmatprep.subr.bf16.mxu1 %v3838_v15  ;;  %v3621_v14 = vld [vmem:[%s4565_s6] sm:$0xff]  }
 0x67a   :  { %v1105_v26 = vpop.f32.mrb[30].mxu0 }
 0x67b   :  { %v3379_v28 = vpop.f32.mrb[31].mxu0  ;;  %3401 = vmatmul.mubr.msk.bf16.vlgmr.msra.gmra.mrb[36].mxu0 %vm229_vm6, %v1111_v9 }
 0x67c   :  { %3420 = vmatprep.mubr.msk.bf16.mxu0 %vm3839_vm1, %v3838_v15  ;;  %3413 = vmatpush3.bf16.msra.mxu0 %v3621_v14  ;;  %v3626_v14 = vld [vmem:[%s4560_s1 + $0x18] sm:$0xff]  }
 0x67d   :  { %3414 = vmatprep.subr.bf16.mxu0 %v3838_v15 }
 0x680   :  { %3415 = vmatpush3.bf16.msra.mxu0 %v3622_v16 }
 0x681   :  { %3416 = vmatprep.subr.bf16.mxu0 %v3838_v15 }
 0x6b8   :  { %v1156_v29 = vpop.f32.mrb[36].mxu1 }
 0x6b9   :  { %v3384_v60 = vpop.f32.mrb[37].mxu1  ;;  %v1304_v30 = vsel %vm76_vm0, %v1156_v29, 0.0 }
 0x6ba   :  { %v1159_v52 = vpop.f32.mrb[38].mxu1 }
 0x6bb   :  { %v3385_v61 = vpop.f32.mrb[39].mxu1  ;;  %v1311_v35 = vsel %vm76_vm0, %v1159_v52, 0.0 }
 0x711   :  { %v1203_v27 = vpop.f32.mrb[32].mxu0 }
 0x712   :  { %v1305_v31 = vsel %vm76_vm0, %v1203_v27, 0.0  ;;  %v3390_v32 = vpop.f32.mrb[33].mxu0 }
 0x713   :  { %v1306_v33 = vadd.f32 %v1305_v31, %v1304_v30  ;;  %v1206_v34 = vpop.f32.mrb[34].mxu0  ;;  %v3100_v31 = vld [vmem:[#allocation7 + $0x2] ss:$0 sm:$0xff] }
 0x714   :  { %v1312_v36 = vsel %vm76_vm0, %v1206_v34, 0.0  ;;  %v3391_v37 = vpop.f32.mrb[35].mxu0 }
 0x715   :  { %v1313_v38 = vadd.f32 %v1312_v36, %v1311_v35  ;;  %v3101_v35 = vld [vmem:[#allocation7 + $0x3] ss:$0 sm:$0xff] }
 0x746   :  { %v1250_v39 = vpop.f32.mrb[40].mxu1 }
 0x747   :  { %v1307_v4 = vsel %vm76_vm0, %v1250_v39, 0.0  ;;  %v3396_v41 = vpop.f32.mrb[41].mxu1 }
 0x748   :  { %v1308_v40 = vadd.f32 %v1307_v4, %v1306_v33  ;;  %v1253_v42 = vpop.f32.mrb[42].mxu1  ;;  %v3623_v4 = vld [vmem:[%s4565_s6 + $0x10] sm:$0xff]   ;;  %v3624_v41 = vld [vmem:[%s4565_s6 + $0x18] sm:$0xff]  }
 0x749   :  { %v1314_v43 = vsel %vm76_vm0, %v1253_v42, 0.0  ;;  %v3397_v44 = vpop.f32.mrb[43].mxu1  ;;  %3417 = vmatpush3.bf16.msra.mxu0 %v3623_v4 }
 0x74a   :  { %v1315_v45 = vadd.f32 %v1314_v43, %v1313_v38  ;;  %3418 = vmatprep.subr.bf16.mxu0 %v3838_v15 }
 0x74d   :  { %3419 = vmatpush3.bf16.msra.mxu0 %v3624_v41 }
 0x74e   :  { %v1297_v46 = vpop.f32.mrb[36].mxu0  ;;  %3438 = vmatprep.subr.bf16.mxu0 %v3838_v15 }
 0x74f   :  { %v1309_v47 = vsel %vm76_vm0, %v1297_v46, 0.0  ;;  %v3402_v49 = vpop.f32.mrb[37].mxu0 }
 0x750   :  { %v1310_v50 = vadd.f32 %v1309_v47, %v1308_v40  ;;  %v1300_v51 = vpop.f32.mrb[38].mxu0  ;;  %v3102_v40 = vld [vmem:[#allocation5] ss:$0 sm:$0xff] }
 0x751   :  { %v1316_v54 = vsel %vm76_vm0, %v1300_v51, 0.0  ;;  %v3403_v55 = vpop.f32.mrb[39].mxu0  ;;  %v3106_v51 = vld [vmem:[#allocation7 + $0x5] ss:$0 sm:$0xff] }
 0x752   :  { %v1323_v56 = vadd.f32 %v3099_v48, %v1310_v50  ;;  %v1317_v57 = vadd.f32 %v1316_v54, %v1315_v45 }
 0x754   :  { %v1324_v58 = vadd.f32 %v3099_v48, %v1317_v57  ;;  %v4192_v59 = vadd.f32 %v1323_v56, %v3933_v0 }
 0x756   :  { %v1329_v62 = vsel %vm76_vm0, %v4192_v59, 0.0  ;;  %v4197_v3 = vadd.f32 %v1324_v58, %v3935_v1 }
 0x757   :  { %1330 = vadd.xlane.f32.xlu1 %v1329_v62 }
 0x758   :  { %v1332_v63 = vsel %vm76_vm0, %v4197_v3, 0.0 }
 0x759   :  { %1333 = vadd.xlane.f32.xlu0 %v1332_v63 }
 0x7e4   :  { %v1331_v10 = vpop.xlane.xlu1 %1330 }
 0x7e5   :  { %v1335_v53 = vmul.f32 0.03125, %v1331_v10 }
 0x7e6   :  { %v1334_v2 = vpop.xlane.xlu0 %1333 }
 0x7e7   :  { %v1337_v5 = vsub.f32 %v4192_v59, %v1335_v53  ;;  %v1336_v6 = vmul.f32 0.03125, %v1334_v2 }
 0x7e9   :  { %v1338_v0 = vsub.f32 %v4197_v3, %v1336_v6  ;;  %v1339_v7 = vmul.f32 %v1337_v5, %v1337_v5 }
 0x7eb   :  { %v1341_v8 = vsel %vm76_vm0, %v1339_v7, 0.0  ;;  %v1340_v11 = vmul.f32 %v1338_v0, %v1338_v0 }
 0x7ec   :  { %1342 = vadd.xlane.f32.xlu0 %v1341_v8 }
 0x7ed   :  { %v1344_v1 = vsel %vm76_vm0, %v1340_v11, 0.0 }
 0x7f0   :  { %1345 = vadd.xlane.f32.xlu0 %v1344_v1 }
 0x879   :  { %v1343_v17 = vpop.xlane.xlu0 %1342 }
 0x87a   :  { %v1347_v18 = vmul.f32 0.032258064, %v1343_v17 }
 0x87c   :  { %3673 = vrsqrt.f32 %v1347_v18  ;;  %vm1351_vm8 = vcmp.eq.f32.partialorder %v1347_v18, inf  ;;  %v1354_v23 = vand.u32 2147483648, %v1347_v18  ;;  %vm1353_vm9 = vcmp.eq.f32.partialorder %v1347_v18, 0.0 }
 0x87d   :  { %v1346_v19 = vpop.xlane.xlu0 %1345 }
 0x87e   :  { %v1348_v20 = vmul.f32 0.032258064, %v1346_v19 }
 0x880   :  { %3675 = vrsqrt.f32 %v1348_v20  ;;  %vm1358_vm10 = vcmp.eq.f32.partialorder %v1348_v20, inf  ;;  %v1361_v29 = vand.u32 2147483648, %v1348_v20  ;;  %vm1360_vm11 = vcmp.eq.f32.partialorder %v1348_v20, 0.0 }
 0x886   :  { %v3674_v21 = vpop.eup %3673 }
 0x887   :  { %v1350_v22 = vmul.f32 %v3674_v21, %v1347_v18 }
 0x889   :  { %v1352_v24 = vsel %vm1351_vm8, %v1347_v18, %v1350_v22 }
 0x88a   :  { %v3676_v9 = vpop.eup %3675  ;;  %v1355_v25 = vsel %vm1353_vm9, %v1354_v23, %v1352_v24 }
 0x88b   :  { %v1363_v26 = vadd.f32 1e-06, %v1355_v25  ;;  %v1357_v28 = vmul.f32 %v3676_v9, %v1348_v20 }
 0x88d   :  { %3677 = vrcp.f32 %v1363_v26  ;;  %v1359_v60 = vsel %vm1358_vm10, %v1348_v20, %v1357_v28 }
 0x88e   :  { %v1362_v52 = vsel %vm1360_vm11, %v1361_v29, %v1359_v60 }
 0x88f   :  { %v1364_v61 = vadd.f32 1e-06, %v1362_v52 }
 0x891   :  { %3679 = vrcp.f32 %v1364_v61 }
 0x897   :  { %v3678_v27 = vpop.eup %3677 }
 0x898   :  { %v1367_v30 = vmul.f32 %v3678_v27, %v1337_v5  ;;  %v3112_v27 = vld [vmem:[#allocation7 + $0x6] ss:$0 sm:$0xff] }
 0x89a   :  { %v1373_v34 = vmul.f32 %v3100_v31, %v1367_v30 }
 0x89b   :  { %v3680_v32 = vpop.eup %3679 }
 0x89c   :  { %v1368_v33 = vmul.f32 %v3680_v32, %v1338_v0  ;;  %v1379_v37 = vadd.f32 %v3101_v35, %v1373_v34  ;;  %v3113_v34 = vld [vmem:[#allocation7 + $0x7] ss:$0 sm:$0xff] }
 0x89e   :  { %v1374_v36 = vmul.f32 %v3100_v31, %v1368_v33 }
 0x8a0   :  { %v1380_v38 = vadd.f32 %v3101_v35, %v1374_v36 }
 0x8a2   :  { %v1381_v39 = vpack.c.bf16 %v1380_v38, %v1379_v37 }
 0x8a4   :  { %3409 = vmatmul.mubr.msk.bf16.vlgmr.msra.gmra.mrb[44].mxu1 %vm76_vm0, %v1381_v39  ;;  %v3119_v39 = vld [vmem:[%s4561_s2 + $0x1] ss:$0 sm:$0xff] }
 0x8a5   :  { %3428 = vmatprep.mubr.msk.bf16.mxu1 %vm3839_vm1, %v3838_v15  ;;  %3425 = vmatpush3.bf16.msra.mxu1 %v3625_v13 }
 0x8a6   :  { %3426 = vmatprep.subr.bf16.mxu1 %v3838_v15 }
 0x8a9   :  { %3427 = vmatpush3.bf16.msra.mxu1 %v3626_v14 }
 0x8aa   :  { %3432 = vmatprep.subr.bf16.mxu1 %v3838_v15 }
 0x977   :  { %v1442_v42 = vpop.f32.mrb[44].mxu1 }
 0x978   :  { %v1443_v43 = vadd.f32 %v3102_v40, %v1442_v42  ;;  %v3410_v44 = vpop.f32.mrb[45].mxu1 }
 0x979   :  { %v1445_v45 = vpop.f32.mrb[46].mxu1 }
 0x97a   :  { %v1446_v46 = vadd.f32 %v3102_v40, %v1445_v45  ;;  %v3411_v47 = vpop.f32.mrb[47].mxu1  ;;  %v1449_v48 = vmax.f32 %v1443_v43, 0.0 }
 0x97c   :  { %v1450_v49 = vmax.f32 %v1446_v46, 0.0 }
 0x97e   :  { %v1451_v50 = vpack.c.bf16 %v1450_v49, %v1449_v48 }
 0x980   :  { %3421 = vmatmul.mubr.msk.bf16.vlgmr.msra.gmra.mrb[40].mxu0 %vm1489_vm12, %v1451_v50 }
 0x981   :  { %3440 = vmatprep.mubr.msk.bf16.mxu0 %vm3839_vm1, %v3838_v15 }
 0xa53   :  { %v1527_v54 = vpop.f32.mrb[40].mxu0 }
 0xa54   :  { %v1528_v55 = vadd.f32 %v3106_v51, %v1527_v54  ;;  %v3422_v56 = vpop.f32.mrb[41].mxu0 }
 0xa55   :  { %v1530_v57 = vpop.f32.mrb[42].mxu0 }
 0xa56   :  { %v4236_v58 = vadd.f32 %v1528_v55, %v4192_v59  ;;  %v1531_v62 = vadd.f32 %v3106_v51, %v1530_v57  ;;  %v3423_v63 = vpop.f32.mrb[43].mxu0 }
 0xa58   :  { %v4239_v10 = vadd.f32 %v1531_v62, %v4197_v3  ;;  %v1538_v53 = vsel %vm76_vm0, %v4236_v58, 0.0 }
 0xa59   :  { %1539 = vadd.xlane.f32.xlu1 %v1538_v53 }
 0xa5a   :  { %v1541_v2 = vsel %vm76_vm0, %v4239_v10, 0.0 }
 0xa5b   :  { %1542 = vadd.xlane.f32.xlu0 %v1541_v2 }
 0xae6   :  { %v1540_v5 = vpop.xlane.xlu1 %1539 }
 0xae7   :  { %v1544_v6 = vmul.f32 0.03125, %v1540_v5 }
 0xae8   :  { %v1543_v0 = vpop.xlane.xlu0 %1542 }
 0xae9   :  { %v1546_v7 = vsub.f32 %v4236_v58, %v1544_v6  ;;  %v1545_v59 = vmul.f32 0.03125, %v1543_v0 }
 0xaeb   :  { %v1547_v8 = vsub.f32 %v4239_v10, %v1545_v59  ;;  %v1548_v11 = vmul.f32 %v1546_v7, %v1546_v7 }
 0xaed   :  { %v1550_v3 = vsel %vm76_vm0, %v1548_v11, 0.0  ;;  %v1549_v1 = vmul.f32 %v1547_v8, %v1547_v8 }
 0xaee   :  { %1551 = vadd.xlane.f32.xlu1 %v1550_v3 }
 0xaef   :  { %v1553_v12 = vsel %vm76_vm0, %v1549_v1, 0.0 }
 0xaf0   :  { %1554 = vadd.xlane.f32.xlu0 %v1553_v12 }
 0xb7b   :  { %v1552_v16 = vpop.xlane.xlu1 %1551 }
 0xb7c   :  { %v1556_v17 = vmul.f32 0.032258064, %v1552_v16 }
 0xb7d   :  { %v1555_v18 = vpop.xlane.xlu0 %1554 }
 0xb7e   :  { %3681 = vrsqrt.f32 %v1556_v17  ;;  %v1557_v19 = vmul.f32 0.032258064, %v1555_v18  ;;  %vm1560_vm13 = vcmp.eq.f32.partialorder %v1556_v17, inf  ;;  %v1563_v22 = vand.u32 2147483648, %v1556_v17 }
 0xb7f   :  { %vm1562_vm14 = vcmp.eq.f32.partialorder %v1556_v17, 0.0 }
 0xb80   :  { %3683 = vrsqrt.f32 %v1557_v19  ;;  %vm1567_vm15 = vcmp.eq.f32.partialorder %v1557_v19, inf  ;;  %v1570_v28 = vand.u32 2147483648, %v1557_v19  ;;  %vm1569_vm2 = vcmp.eq.f32.partialorder %v1557_v19, 0.0 }
 0xb88   :  { %v3682_v20 = vpop.eup %3681 }
 0xb89   :  { %v1559_v21 = vmul.f32 %v3682_v20, %v1556_v17 }
 0xb8a   :  { %v3684_v23 = vpop.eup %3683 }
 0xb8b   :  { %v1561_v24 = vsel %vm1560_vm13, %v1556_v17, %v1559_v21  ;;  %v1566_v25 = vmul.f32 %v3684_v23, %v1557_v19 }
 0xb8c   :  { %v1564_v9 = vsel %vm1562_vm14, %v1563_v22, %v1561_v24 }
 0xb8d   :  { %v1572_v26 = vadd.f32 1e-06, %v1564_v9  ;;  %v1568_v29 = vsel %vm1567_vm15, %v1557_v19, %v1566_v25 }
 0xb8e   :  { %v1571_v60 = vsel %vm1569_vm2, %v1570_v28, %v1568_v29 }
 0xb8f   :  { %3685 = vrcp.f32 %v1572_v26  ;;  %v1573_v52 = vadd.f32 1e-06, %v1571_v60 }
 0xb91   :  { %3687 = vrcp.f32 %v1573_v52 }
 0xb99   :  { %v3686_v61 = vpop.eup %3685 }
 0xb9a   :  { %v1576_v30 = vmul.f32 %v3686_v61, %v1546_v7 }
 0xb9b   :  { %v3688_v31 = vpop.eup %3687 }
 0xb9c   :  { %v1577_v32 = vmul.f32 %v3688_v31, %v1547_v8  ;;  %v1582_v33 = vmul.f32 %v3112_v27, %v1576_v30 }
 0xb9e   :  { %v1583_v35 = vmul.f32 %v3112_v27, %v1577_v32  ;;  %v1588_v36 = vadd.f32 %v3113_v34, %v1582_v33 }
 0xba0   :  { %v1589_v37 = vadd.f32 %v3113_v34, %v1583_v35 }
 0xba2   :  { %v1590_v38 = vpack.c.bf16 %v1589_v37, %v1588_v36 }
 0xba4   :  { %3429 = vmatmul.mubr.msk.bf16.vlgmr.msra.gmra.mrb[48].mxu1 %vm76_vm0, %v1590_v38 }
 0xba5   :  { %3434 = vmatprep.mubr.msk.bf16.mxu1 %vm3839_vm1, %v3838_v15 }
 0xc77   :  { %v1653_v4 = vpop.f32.mrb[48].mxu1 }
 0xc78   :  { %v3430_v41 = vpop.f32.mrb[49].mxu1  ;;  %v1654_v42 = vadd.f32 %v3119_v39, %v1653_v4 }
 0xc79   :  { %v1656_v40 = vpop.f32.mrb[50].mxu1 }
 0xc7a   :  { %v1657_v43 = vadd.f32 %v3119_v39, %v1656_v40  ;;  %v3431_v44 = vpop.f32.mrb[51].mxu1  ;;  %v4266_v46 = vpack.c.bf16 %v1654_v42, %v1654_v42 }
 0xc7c   :  { %v3607_v45 = vpack.i.bf16 %v1657_v43, %v1654_v42  ;;  %v4270_v47 = vpack.c.bf16 %v1657_v43, %v1657_v43 }
 0xc7e   :  { %3608 = vrot.lane.b32.xlu0 %v3607_v45, %s3840_s26  ;;  %3603 = vrot.lane.b32.xlu1 %v3607_v45, %s3841_s27 }
 0xc82   :  { %3613 = vrot.lane.b32.xlu1 %v3607_v45, %s3842_s29 }
 0xc86   :  { %1689 = vrot.lane.b32.xlu1 %v4266_v46, %s3843_s30 }
 0xc8a   :  { %1738 = vrot.lane.b32.xlu1 %v4270_v47, %s3843_s30 }
 0xcf0   :  { %v3609_v48 = vpop.permute.xlu0 %3608  ;;  %v3604_v49 = vpop.permute.xlu1 %3603 }
 0xcf1   :  { %v3606_v50 = vunpack.i.h.bf16 %v3604_v49  ;;  %v3605_v51 = vunpack.i.l.bf16 %v3604_v49  ;;  %v3611_v54 = vunpack.i.h.bf16 %v3609_v48  ;;  %v3610_v55 = vunpack.i.l.bf16 %v3609_v48 }
 0xcf3   :  { %v4274_v56 = vpack.c.bf16 %v3606_v50, %v3606_v50  ;;  %v4276_v57 = vpack.c.bf16 %v3605_v51, %v3605_v51  ;;  %v4282_v63 = vpack.c.bf16 %v3611_v54, %v3611_v54  ;;  %v4284_v53 = vpack.c.bf16 %v3610_v55, %v3610_v55 }
 0xcf4   :  { %v3614_v62 = vpop.permute.xlu1 %3613 }
 0xcf5   :  { %1787 = vrot.lane.b32.xlu0 %v4276_v57, %s3843_s30  ;;  %1836 = vrot.lane.b32.xlu1 %v4274_v56, %s3843_s30  ;;  %v3616_v2 = vunpack.i.h.bf16 %v3614_v62  ;;  %v3615_v5 = vunpack.i.l.bf16 %v3614_v62 }
 0xcf7   :  { %v4291_v7 = vpack.c.bf16 %v3616_v2, %v3616_v2  ;;  %v4293_v59 = vpack.c.bf16 %v3615_v5, %v3615_v5 }
 0xcf8   :  { %v1690_v6 = vpop.permute.xlu1 %1689 }
 0xcf9   :  { %v1695_v0 = vsel %vm229_vm6, %v1690_v6, 0  ;;  %1885 = vrot.lane.b32.xlu0 %v4284_v53, %s3843_s30  ;;  %1934 = vrot.lane.b32.xlu1 %v4282_v63, %s3843_s30 }
 0xcfa   :  { %3433 = vmatpush3.bf16.xpose.msra.mxu1 %v1695_v0 }
 0xcfb   :  { %3444 = vmatprep.subr.bf16.mxu1 %v3838_v15 }
 0xcfc   :  { %v1739_v8 = vpop.permute.xlu1 %1738 }
 0xcfd   :  { %v1744_v11 = vsel %vm229_vm6, %v1739_v8, 0  ;;  %1983 = vrot.lane.b32.xlu0 %v4293_v59, %s3843_s30  ;;  %2032 = vrot.lane.b32.xlu1 %v4291_v7, %s3843_s30 }
 0xcfe   :  { %3439 = vmatpush3.bf16.xpose.msra.mxu0 %v1744_v11 }
 0xcff   :  { %3450 = vmatprep.subr.bf16.mxu0 %v3838_v15 }
 0xd01   :  { %3435 = vmatmul.mubr.msk.bf16.vlgmr.msra.gmra.mrb[52].mxu1 %vm229_vm6, %v4266_v46 }
 0xd02   :  { %3446 = vmatprep.mubr.msk.bf16.mxu1 %vm3839_vm1, %v3838_v15 }
 0xd05   :  { %3441 = vmatmul.mubr.msk.bf16.vlgmr.msra.gmra.mrb[44].mxu0 %vm229_vm6, %v4270_v47 }
 0xd06   :  { %3452 = vmatprep.mubr.msk.bf16.mxu0 %vm3839_vm1, %v3838_v15 }
 0xd67   :  { %v1788_v3 = vpop.permute.xlu0 %1787  ;;  %v1837_v1 = vpop.permute.xlu1 %1836 }
 0xd68   :  { %v1793_v12 = vsel %vm229_vm6, %v1788_v3, 0  ;;  %v1842_v13 = vsel %vm229_vm6, %v1837_v1, 0 }
 0xd69   :  { %3445 = vmatpush3.bf16.xpose.msra.mxu1 %v1793_v12  ;;  %3451 = vmatpush3.bf16.xpose.msra.mxu0 %v1842_v13 }
 0xd6a   :  { %3456 = vmatprep.subr.bf16.mxu1 %v3838_v15  ;;  %3462 = vmatprep.subr.bf16.mxu0 %v3838_v15 }
 0xd6b   :  { %v1886_v14 = vpop.permute.xlu0 %1885  ;;  %v1935_v16 = vpop.permute.xlu1 %1934 }
 0xd6c   :  { %v1891_v17 = vsel %vm229_vm6, %v1886_v14, 0  ;;  %v1940_v18 = vsel %vm229_vm6, %v1935_v16, 0 }
 0xd6f   :  { %v1984_v19 = vpop.permute.xlu0 %1983  ;;  %v2033_v20 = vpop.permute.xlu1 %2032 }
 0xd70   :  { %3447 = vmatmul.mubr.msk.bf16.vlgmr.msra.gmra.mrb[56].mxu1 %vm229_vm6, %v4276_v57  ;;  %3453 = vmatmul.mubr.msk.bf16.vlgmr.msra.gmra.mrb[48].mxu0 %vm229_vm6, %v4274_v56  ;;  %v1989_v21 = vsel %vm229_vm6, %v1984_v19, 0  ;;  %v2038_v22 = vsel %vm229_vm6, %v2033_v20, 0 }
 0xd71   :  { %3457 = vmatpush3.bf16.xpose.msra.mxu1 %v1891_v17  ;;  %3463 = vmatpush3.bf16.xpose.msra.mxu0 %v1940_v18 }
 0xd72   :  { %3458 = vmatprep.mubr.msk.bf16.mxu1 %vm3839_vm1, %v3838_v15  ;;  %3464 = vmatprep.mubr.msk.bf16.mxu0 %vm3839_vm1, %v3838_v15 }
 0xd73   :  { %3468 = vmatprep.subr.bf16.mxu1 %v3838_v15  ;;  %3474 = vmatprep.subr.bf16.mxu0 %v3838_v15 }
 0xd78   :  { %3459 = vmatmul.mubr.msk.bf16.vlgmr.msra.gmra.mrb[60].mxu1 %vm229_vm6, %v4284_v53  ;;  %3465 = vmatmul.mubr.msk.bf16.vlgmr.msra.gmra.mrb[52].mxu0 %vm229_vm6, %v4282_v63 }
 0xd79   :  { %3469 = vmatpush3.bf16.xpose.msra.mxu1 %v1989_v21  ;;  %3475 = vmatpush3.bf16.xpose.msra.mxu0 %v2038_v22 }
 0xd7a   :  { %3470 = vmatprep.mubr.msk.bf16.mxu1 %vm3839_vm1, %v3838_v15  ;;  %3476 = vmatprep.mubr.msk.bf16.mxu0 %vm3839_vm1, %v3838_v15 }
 0xd7b   :  { %3486 = vmatprep.subr.bf16.mxu0 %v3838_v15  ;;  %3480 = vmatprep.subr.bf16.mxu1 %v3838_v15 }
 0xd80   :  { %3471 = vmatmul.mubr.msk.bf16.vlgmr.msra.gmra.mrb[64].mxu1 %vm229_vm6, %v4293_v59  ;;  %3477 = vmatmul.mubr.msk.bf16.vlgmr.msra.gmra.mrb[56].mxu0 %vm229_vm6, %v4291_v7 }
 0xd81   :  { %3482 = vmatprep.mubr.msk.bf16.mxu1 %vm3839_vm1, %v3838_v15  ;;  %3488 = vmatprep.mubr.msk.bf16.mxu0 %vm3839_vm1, %v3838_v15 }
 0xdd4   :  { %v1731_v23 = vpop.f32.mrb[52].mxu1 }
 0xdd5   :  { %v2080_v24 = vmul.f32 0.35355338, %v1731_v23  ;;  %v3436_v9 = vpop.f32.mrb[53].mxu1 }
 0xdd6   :  { %v1734_v25 = vpop.f32.mrb[54].mxu1 }
 0xdd7   :  { %v3437_v26 = vpop.f32.mrb[55].mxu1  ;;  %v2088_v28 = vsel %vm229_vm6, %v2080_v24, -inf }
 0xdd8   :  { %v1780_v29 = vpop.f32.mrb[44].mxu0  ;;  %2089 = vmax.xlane.f32.xlu0 %v2088_v28 }
 0xdd9   :  { %v2081_v60 = vmul.f32 0.35355338, %v1780_v29  ;;  %v3442_v52 = vpop.f32.mrb[45].mxu0 }
 0xdda   :  { %v1783_v61 = vpop.f32.mrb[46].mxu0 }
 0xddb   :  { %v3443_v27 = vpop.f32.mrb[47].mxu0  ;;  %v2091_v30 = vsel %vm229_vm6, %v2081_v60, -inf }
 0xddc   :  { %2092 = vmax.xlane.f32.xlu1 %v2091_v30 }
 0xe43   :  { %v1829_v31 = vpop.f32.mrb[56].mxu1  ;;  %v1878_v32 = vpop.f32.mrb[48].mxu0 }
 0xe44   :  { %v2082_v33 = vmul.f32 0.35355338, %v1829_v31  ;;  %v3448_v34 = vpop.f32.mrb[57].mxu1  ;;  %v3454_v35 = vpop.f32.mrb[49].mxu0  ;;  %v2083_v38 = vmul.f32 0.35355338, %v1878_v32 }
 0xe45   :  { %v1832_v36 = vpop.f32.mrb[58].mxu1  ;;  %v1881_v37 = vpop.f32.mrb[50].mxu0 }
 0xe46   :  { %v3449_v39 = vpop.f32.mrb[59].mxu1  ;;  %v3455_v4 = vpop.f32.mrb[51].mxu0  ;;  %v2094_v41 = vsel %vm229_vm6, %v2082_v33, -inf  ;;  %v2097_v40 = vsel %vm229_vm6, %v2083_v38, -inf }
 0xe47   :  { %2095 = vmax.xlane.f32.xlu0 %v2094_v41 }
 0xe4b   :  { %v1976_v42 = vpop.f32.mrb[52].mxu0  ;;  %2098 = vmax.xlane.f32.xlu0 %v2097_v40  ;;  %v1927_v43 = vpop.f32.mrb[60].mxu1 }
 0xe4c   :  { %v2085_v44 = vmul.f32 0.35355338, %v1976_v42  ;;  %v4350_v45 = vmul.f32 0.35355338, %v1927_v43  ;;  %v3460_v48 = vpop.f32.mrb[61].mxu1  ;;  %v3466_v49 = vpop.f32.mrb[53].mxu0 }
 0xe4d   :  { %v1930_v50 = vpop.f32.mrb[62].mxu1  ;;  %v1979_v51 = vpop.f32.mrb[54].mxu0 }
 0xe4e   :  { %v3461_v54 = vpop.f32.mrb[63].mxu1  ;;  %v3467_v55 = vpop.f32.mrb[55].mxu0  ;;  %v2103_v62 = vsel %vm229_vm6, %v2085_v44, -inf  ;;  %v2100_v2 = vsel %vm229_vm6, %v4350_v45, -inf }
 0xe4f   :  { %2104 = vmax.xlane.f32.xlu1 %v2103_v62  ;;  %2101 = vmax.xlane.f32.xlu0 %v2100_v2 }
 0xe53   :  { %v2025_v5 = vpop.f32.mrb[64].mxu1  ;;  %v2074_v6 = vpop.f32.mrb[56].mxu0 }
 0xe54   :  { %v4355_v0 = vmul.f32 0.35355338, %v2025_v5  ;;  %v3472_v8 = vpop.f32.mrb[65].mxu1  ;;  %v3478_v11 = vpop.f32.mrb[57].mxu0  ;;  %v2087_v19 = vmul.f32 0.35355338, %v2074_v6 }
 0xe55   :  { %v2028_v3 = vpop.f32.mrb[66].mxu1  ;;  %v2077_v1 = vpop.f32.mrb[58].mxu0 }
 0xe56   :  { %v3473_v12 = vpop.f32.mrb[67].mxu1  ;;  %v3479_v13 = vpop.f32.mrb[59].mxu0  ;;  %v2106_v14 = vsel %vm229_vm6, %v4355_v0, -inf  ;;  %v2109_v20 = vsel %vm229_vm6, %v2087_v19, -inf }
 0xe57   :  { %2107 = vmax.xlane.f32.xlu0 %v2106_v14 }
 0xe60   :  { %2232 = vrot.lane.b32.xlu1 %v4270_v47, %s3844_s9 }
 0xe64   :  { %2280 = vrot.lane.b32.xlu1 %v4276_v57, %s3844_s9 }
 0xe65   :  { %v2090_v16 = vpop.xlane.xlu0 %2089 }
 0xe66   :  { %v2112_v17 = vsub.f32 %v2080_v24, %v2090_v16 }
 0xe68   :  { %v2120_v18 = vmul.f32 1.442695, %v2112_v17 }
 0xe69   :  { %v2093_v47 = vpop.xlane.xlu1 %2092 }
 0xe6a   :  { %3689 = vpow2.f32 %v2120_v18  ;;  %v2113_v57 = vsub.f32 %v2081_v60, %v2093_v47 }
 0xe6d   :  { %2184 = vrot.lane.b32.xlu0 %v4266_v46, %s3844_s9  ;;  %v2122_v46 = vmul.f32 1.442695, %v2113_v57 }
 0xe6f   :  { %3691 = vpow2.f32 %v2122_v46 }
 0xe74   :  { %v4366_v21 = vpop.eup %3689 }
 0xe75   :  { %v2136_v22 = vsel %vm229_vm6, %v4366_v21, 0.0 }
 0xe79   :  { %v4372_v23 = vpop.eup %3691 }
 0xe7a   :  { %v2139_v24 = vsel %vm229_vm6, %v4372_v23, 0.0 }
 0xe88   :  { %2110 = vmax.xlane.f32.xlu1 %v2109_v20 }
 0xe8c   :  { %2137 = vadd.xlane.f32.xlu0 %v2136_v22 }
 0xe99   :  { %2328 = vrot.lane.b32.xlu1 %v4274_v56, %s3844_s9 }
 0xebd   :  { %2140 = vadd.xlane.f32.xlu1 %v2139_v24 }
 0xece   :  { %2424 = vrot.lane.b32.xlu1 %v4282_v63, %s3844_s9 }
 0xed4   :  { %v2096_v9 = vpop.xlane.xlu0 %2095 }
 0xed5   :  { %v2114_v25 = vsub.f32 %v2082_v33, %v2096_v9 }
 0xed7   :  { %v2124_v26 = vmul.f32 1.442695, %v2114_v25 }
 0xed8   :  { %v2099_v28 = vpop.xlane.xlu0 %2098 }
 0xed9   :  { %3693 = vpow2.f32 %v2124_v26  ;;  %v2115_v29 = vsub.f32 %v2083_v38, %v2099_v28 }
 0xedb   :  { %v2126_v52 = vmul.f32 1.442695, %v2115_v29 }
 0xedc   :  { %v2105_v56 = vpop.xlane.xlu1 %2104  ;;  %v2102_v61 = vpop.xlane.xlu0 %2101 }
 0xedd   :  { %v2117_v60 = vsub.f32 %v2085_v44, %v2105_v56  ;;  %3695 = vpow2.f32 %v2126_v52  ;;  %v2116_v4 = vsub.f32 %v4350_v45, %v2102_v61 }
 0xedf   :  { %v2130_v63 = vmul.f32 1.442695, %v2117_v60  ;;  %v2128_v41 = vmul.f32 1.442695, %v2116_v4 }
 0xee0   :  { %v2233_v27 = vpop.permute.xlu1 %2232 }
 0xee1   :  { %v2238_v30 = vsel %vm728_vm7, %v2233_v27, 0  ;;  %3697 = vpow2.f32 %v2130_v63 }
 0xee2   :  { %3487 = vmatpush3.bf16.msra.mxu0 %v2238_v30  ;;  %3699 = vpow2.f32 %v2128_v41 }
 0xee3   :  { %v4379_v31 = vpop.eup %3693  ;;  %3498 = vmatprep.subr.bf16.mxu0 %v3838_v15 }
 0xee4   :  { %v2108_v32 = vpop.xlane.xlu0 %2107  ;;  %v2142_v33 = vsel %vm229_vm6, %v4379_v31, 0.0  ;;  %v2281_v43 = vpop.permute.xlu1 %2280 }
 0xee5   :  { %2143 = vadd.xlane.f32.xlu0 %v2142_v33  ;;  %v2118_v40 = vsub.f32 %v4355_v0, %v2108_v32  ;;  %v2286_v0 = vsel %vm728_vm7, %v2281_v43, 0  ;;  %v3139_v32 = vld [vmem:[%s4562_s3 + $0x10] sm:$0xf]  ;;  %v3141_v43 = vld [vmem:[%s4562_s3 + $0x18] sm:$0xf] }
 0xee7   :  { %v4386_v36 = vpop.eup %3695  ;;  %v2132_v42 = vmul.f32 1.442695, %v2118_v40 }
 0xee8   :  { %v2185_v34 = vpop.permute.xlu0 %2184  ;;  %v2145_v37 = vsel %vm229_vm6, %v4386_v36, 0.0 }
 0xee9   :  { %v2190_v35 = vsel %vm728_vm7, %v2185_v34, 0  ;;  %3701 = vpow2.f32 %v2132_v42  ;;  %v2581_v34 = vsel %vm728_vm7, %v3139_v32, 0 }
 0xeea   :  { %3481 = vmatpush3.bf16.msra.mxu1 %v2190_v35 }
 0xeeb   :  { %3492 = vmatprep.subr.bf16.mxu1 %v3838_v15  ;;  %v4390_v38 = vpop.eup %3697 }
 0xeec   :  { %v2151_v39 = vsel %vm229_vm6, %v4390_v38, 0.0  ;;  %v4398_v48 = vpop.eup %3699 }
 0xeed   :  { %v2148_v54 = vsel %vm229_vm6, %v4398_v48, 0.0 }
 0xef2   :  { %2146 = vadd.xlane.f32.xlu1 %v2145_v37 }
 0xef3   :  { %v4402_v55 = vpop.eup %3701 }
 0xef6   :  { %2152 = vadd.xlane.f32.xlu1 %v2151_v39 }
 0xefb   :  { %2376 = vrot.lane.b32.xlu0 %v4284_v53, %s3844_s9  ;;  %v2154_v53 = vsel %vm229_vm6, %v4402_v55, 0.0 }
 0xf15   :  { %v2111_v44 = vpop.xlane.xlu1 %2110 }
 0xf16   :  { %v2119_v49 = vsub.f32 %v2087_v19, %v2111_v44 }
 0xf18   :  { %v2134_v50 = vmul.f32 1.442695, %v2119_v49 }
 0xf19   :  { %v2138_v51 = vpop.xlane.xlu0 %2137  ;;  %v2329_v8 = vpop.permute.xlu1 %2328 }
 0xf1a   :  { %3703 = vpow2.f32 %v2134_v50  ;;  %2149 = vadd.xlane.f32.xlu0 %v2148_v54  ;;  %v2334_v13 = vsel %vm728_vm7, %v2329_v8, 0  ;;  %v2675_v50 = vsel %vm728_vm7, %v3141_v43, 0 }
 0xf1b   :  { %3705 = vrcp.f32 %v2138_v51 }
 0xf1e   :  { %2155 = vadd.xlane.f32.xlu0 %v2154_v53 }
 0xf24   :  { %v4406_v45 = vpop.eup %3703 }
 0xf25   :  { %v3706_v62 = vpop.eup %3705  ;;  %v2157_v2 = vsel %vm229_vm6, %v4406_v45, 0.0 }
 0xf26   :  { %v2168_v5 = vmul.f32 %v3706_v62, %v4366_v21  ;;  %2158 = vadd.xlane.f32.xlu1 %v2157_v2  ;;  %v3142_v2 = vld [vmem:[%s4562_s3 + $0x1c] sm:$0xf] }
 0xf27   :  { %v2722_v8 = vsel %vm728_vm7, %v3142_v2, 0 }
 0xf28   :  { %v2176_v6 = vpack.c.bf16 %v2168_v5, %v2168_v5 }
 0xf2a   :  { %3483 = vmatmul.mubr.msk.bf16.vlgmr.msra.gmra.mrb[68].mxu1 %vm229_vm6, %v2176_v6 }
 0xf2b   :  { %3493 = vmatpush3.bf16.msra.mxu1 %v2286_v0  ;;  %3494 = vmatprep.mubr.msk.bf16.mxu1 %vm3839_vm1, %v3838_v15 }
 0xf2c   :  { %3504 = vmatprep.subr.bf16.mxu1 %v3838_v15 }
 0xf34   :  { %2472 = vrot.lane.b32.xlu0 %v4293_v59, %s3844_s9 }
 0xf37   :  { %2520 = vrot.lane.b32.xlu1 %v4291_v7, %s3844_s9 }
 0xf4a   :  { %v2141_v11 = vpop.xlane.xlu1 %2140 }
 0xf4b   :  { %3707 = vrcp.f32 %v2141_v11 }
 0xf4e   :  { %v2425_v7 = vpop.permute.xlu1 %2424 }
 0xf55   :  { %v3708_v3 = vpop.eup %3707 }
 0xf56   :  { %v2169_v1 = vmul.f32 %v3708_v3, %v4372_v23  ;;  %v2430_v23 = vsel %vm728_vm7, %v2425_v7, 0 }
 0xf58   :  { %v2177_v12 = vpack.c.bf16 %v2169_v1, %v2169_v1 }
 0xf5a   :  { %3489 = vmatmul.mubr.msk.bf16.vlgmr.msra.gmra.mrb[60].mxu0 %vm229_vm6, %v2177_v12 }
 0xf5b   :  { %3499 = vmatpush3.bf16.msra.mxu0 %v2334_v13  ;;  %3500 = vmatprep.mubr.msk.bf16.mxu0 %vm3839_vm1, %v3838_v15 }
 0xf5c   :  { %3510 = vmatprep.subr.bf16.mxu0 %v3838_v15 }
 0xf72   :  { %v2144_v59 = vpop.xlane.xlu0 %2143 }
 0xf73   :  { %3709 = vrcp.f32 %v2144_v59 }
 0xf76   :  { %v2377_v17 = vpop.permute.xlu0 %2376 }
 0xf77   :  { %v2382_v20 = vsel %vm728_vm7, %v2377_v17, 0 }
 0xf7d   :  { %v3710_v14 = vpop.eup %3709 }
 0xf7e   :  { %v2170_v16 = vmul.f32 %v3710_v14, %v4379_v31 }
 0xf7f   :  { %v2147_v18 = vpop.xlane.xlu1 %2146 }
 0xf80   :  { %3711 = vrcp.f32 %v2147_v18  ;;  %v2178_v19 = vpack.c.bf16 %v2170_v16, %v2170_v16 }
 0xf82   :  { %3495 = vmatmul.mubr.msk.bf16.vlgmr.msra.gmra.mrb[72].mxu1 %vm229_vm6, %v2178_v19 }
 0xf83   :  { %3505 = vmatpush3.bf16.msra.mxu1 %v2382_v20  ;;  %v2153_v21 = vpop.xlane.xlu1 %2152  ;;  %3506 = vmatprep.mubr.msk.bf16.mxu1 %vm3839_vm1, %v3838_v15 }
 0xf84   :  { %3713 = vrcp.f32 %v2153_v21  ;;  %3516 = vmatprep.subr.bf16.mxu1 %v3838_v15 }
 0xf8a   :  { %v3712_v22 = vpop.eup %3711 }
 0xf8b   :  { %v2171_v47 = vmul.f32 %v3712_v22, %v4386_v36 }
 0xf8d   :  { %v2179_v57 = vpack.c.bf16 %v2171_v47, %v2171_v47 }
 0xf8e   :  { %v3714_v46 = vpop.eup %3713 }
 0xf8f   :  { %3501 = vmatmul.mubr.msk.bf16.vlgmr.msra.gmra.mrb[64].mxu0 %vm229_vm6, %v2179_v57  ;;  %v2173_v24 = vmul.f32 %v3714_v46, %v4390_v38  ;;  %v3140_v38 = vld [vmem:[%s4562_s3 + $0x14] sm:$0xf] }
 0xf90   :  { %3511 = vmatpush3.bf16.msra.mxu0 %v2430_v23  ;;  %3512 = vmatprep.mubr.msk.bf16.mxu0 %vm3839_vm1, %v3838_v15  ;;  %v2628_v39 = vsel %vm728_vm7, %v3140_v38, 0 }
 0xf91   :  { %3522 = vmatprep.subr.bf16.mxu0 %v3838_v15  ;;  %v2181_v9 = vpack.c.bf16 %v2173_v24, %v2173_v24 }
 0xf97   :  { %3513 = vmatmul.mubr.msk.bf16.vlgmr.msra.gmra.mrb[68].mxu0 %vm229_vm6, %v2181_v9 }
 0xf98   :  { %3524 = vmatprep.mubr.msk.bf16.mxu0 %vm3839_vm1, %v3838_v15 }
 0xfa7   :  { %v2150_v25 = vpop.xlane.xlu0 %2149 }
 0xfa8   :  { %3715 = vrcp.f32 %v2150_v25 }
 0xfab   :  { %v2156_v26 = vpop.xlane.xlu0 %2155 }
 0xfac   :  { %3717 = vrcp.f32 %v2156_v26 }
 0xfaf   :  { %v2473_v52 = vpop.permute.xlu0 %2472 }
 0xfb0   :  { %v2478_v27 = vsel %vm728_vm7, %v2473_v52, 0 }
 0xfb2   :  { %v3716_v28 = vpop.eup %3715 }
 0xfb3   :  { %v2172_v29 = vmul.f32 %v3716_v28, %v4398_v48  ;;  %v2159_v56 = vpop.xlane.xlu1 %2158 }
 0xfb4   :  { %3719 = vrcp.f32 %v2159_v56 }
 0xfb5   :  { %v2180_v60 = vpack.c.bf16 %v2172_v29, %v2172_v29 }
 0xfb6   :  { %v3718_v61 = vpop.eup %3717 }
 0xfb7   :  { %v2521_v30 = vpop.permute.xlu1 %2520  ;;  %3507 = vmatmul.mubr.msk.bf16.vlgmr.msra.gmra.mrb[76].mxu1 %vm229_vm6, %v2180_v60  ;;  %v2174_v63 = vmul.f32 %v3718_v61, %v4402_v55 }
 0xfb8   :  { %v2526_v31 = vsel %vm728_vm7, %v2521_v30, 0  ;;  %3517 = vmatpush3.bf16.msra.mxu1 %v2478_v27  ;;  %3518 = vmatprep.mubr.msk.bf16.mxu1 %vm3839_vm1, %v3838_v15 }
 0xfb9   :  { %3523 = vmatpush3.bf16.msra.mxu0 %v2526_v31  ;;  %3528 = vmatprep.subr.bf16.mxu1 %v3838_v15  ;;  %v2182_v33 = vpack.c.bf16 %v2174_v63, %v2174_v63 }
 0xfba   :  { %3534 = vmatprep.subr.bf16.mxu0 %v3838_v15 }
 0xfbe   :  { %v3720_v35 = vpop.eup %3719 }
 0xfbf   :  { %v2175_v36 = vmul.f32 %v3720_v35, %v4406_v45  ;;  %3519 = vmatmul.mubr.msk.bf16.vlgmr.msra.gmra.mrb[80].mxu1 %vm229_vm6, %v2182_v33 }
 0xfc0   :  { %3529 = vmatpush3.bf16.msra.mxu1 %v2581_v34  ;;  %3530 = vmatprep.mubr.msk.bf16.mxu1 %vm3839_vm1, %v3838_v15 }
 0xfc1   :  { %v2183_v37 = vpack.c.bf16 %v2175_v36, %v2175_v36  ;;  %3540 = vmatprep.subr.bf16.mxu1 %v3838_v15 }
 0xfc3   :  { %3525 = vmatmul.mubr.msk.bf16.vlgmr.msra.gmra.mrb[72].mxu0 %vm229_vm6, %v2183_v37 }
 0xfc4   :  { %3536 = vmatprep.mubr.msk.bf16.mxu0 %vm3839_vm1, %v3838_v15  ;;  %3535 = vmatpush3.bf16.msra.mxu0 %v2628_v39 }
 0xfc5   :  { %3546 = vmatprep.subr.bf16.mxu0 %v3838_v15 }
 0xffd   :  { %v2226_v4 = vpop.f32.mrb[68].mxu1 }
 0xffe   :  { %v3484_v41 = vpop.f32.mrb[69].mxu1 }
 0xfff   :  { %v2229_v40 = vpop.f32.mrb[70].mxu1 }
0x1000   :  { %v3485_v42 = vpop.f32.mrb[71].mxu1 }
0x1001   :  { %v3147_v42 = vld [vmem:[#allocation7 + $0xa] ss:$0 sm:$0xff] }
0x102d   :  { %v2274_v44 = vpop.f32.mrb[60].mxu0 }
0x102e   :  { %v2568_v48 = vpack.c.bf16 %v2274_v44, %v2226_v4  ;;  %v3490_v49 = vpop.f32.mrb[61].mxu0 }
0x102f   :  { %v2277_v51 = vpop.f32.mrb[62].mxu0 }
0x1030   :  { %v3491_v54 = vpop.f32.mrb[63].mxu0  ;;  %3531 = vmatmul.mubr.msk.bf16.vlgmr.msra.gmra.mrb[84].mxu1 %vm229_vm6, %v2568_v48 }
0x1031   :  { %3541 = vmatpush3.bf16.msra.mxu1 %v2675_v50  ;;  %3542 = vmatprep.mubr.msk.bf16.mxu1 %vm3839_vm1, %v3838_v15 }
0x1032   :  { %3552 = vmatprep.subr.bf16.mxu1 %v3838_v15 }
0x1055   :  { %v2322_v55 = vpop.f32.mrb[72].mxu1 }
0x1056   :  { %v3496_v53 = vpop.f32.mrb[73].mxu1 }
0x1057   :  { %v2325_v45 = vpop.f32.mrb[74].mxu1 }
0x1058   :  { %v3497_v62 = vpop.f32.mrb[75].mxu1 }
0x1062   :  { %v2370_v5 = vpop.f32.mrb[64].mxu0 }
0x1063   :  { %v2569_v6 = vpack.c.bf16 %v2370_v5, %v2322_v55  ;;  %v3502_v0 = vpop.f32.mrb[65].mxu0 }
0x1064   :  { %v2373_v11 = vpop.f32.mrb[66].mxu0 }
0x1065   :  { %v3503_v3 = vpop.f32.mrb[67].mxu0  ;;  %3537 = vmatmul.mubr.msk.bf16.vlgmr.msra.gmra.mrb[76].mxu0 %vm229_vm6, %v2569_v6 }
0x1066   :  { %3547 = vmatpush3.bf16.msra.mxu0 %v2722_v8  ;;  %3548 = vmatprep.mubr.msk.bf16.mxu0 %vm3839_vm1, %v3838_v15 }
0x1067   :  { %3560 = vmatprep.subr.bf16.mxu0 %v3838_v15 }
0x106a   :  { %v2466_v1 = vpop.f32.mrb[68].mxu0 }
0x106b   :  { %v3514_v12 = vpop.f32.mrb[69].mxu0 }
0x106c   :  { %v2469_v13 = vpop.f32.mrb[70].mxu0 }
0x106d   :  { %v3515_v59 = vpop.f32.mrb[71].mxu0  ;;  %v3627_v13 = vld [vmem:[%s4563_s4 + $0x10] sm:$0xff]  }
0x106e   :  { %v3628_v59 = vld [vmem:[%s4563_s4 + $0x18] sm:$0xff]  }
0x108a   :  { %v2418_v7 = vpop.f32.mrb[76].mxu1 }
0x108b   :  { %v2570_v14 = vpack.c.bf16 %v2466_v1, %v2418_v7  ;;  %v3508_v16 = vpop.f32.mrb[77].mxu1  ;;  %v3629_v7 = vld [vmem:[%s4565_s6 + $0x20] sm:$0xff]  }
0x108c   :  { %v2421_v17 = vpop.f32.mrb[78].mxu1 }
0x108d   :  { %v3509_v18 = vpop.f32.mrb[79].mxu1  ;;  %3543 = vmatmul.mubr.msk.bf16.vlgmr.msra.gmra.mrb[88].mxu1 %vm229_vm6, %v2570_v14  ;;  %v3630_v14 = vld [vmem:[%s4565_s6 + $0x28] sm:$0xff]  }
0x108e   :  { %3556 = vmatprep.mubr.msk.bf16.mxu1 %vm3839_vm1, %v3838_v15  ;;  %3553 = vmatpush3.bf16.msra.mxu1 %v3627_v13 }
0x108f   :  { %3554 = vmatprep.subr.bf16.mxu1 %v3838_v15 }
0x1092   :  { %v2514_v19 = vpop.f32.mrb[80].mxu1  ;;  %3555 = vmatpush3.bf16.msra.mxu1 %v3628_v59 }
0x1093   :  { %v3520_v20 = vpop.f32.mrb[81].mxu1 }
0x1094   :  { %v2517_v21 = vpop.f32.mrb[82].mxu1 }
0x1095   :  { %v3521_v22 = vpop.f32.mrb[83].mxu1 }
0x1096   :  { %v2562_v47 = vpop.f32.mrb[72].mxu0 }
0x1097   :  { %v2571_v57 = vpack.c.bf16 %v2562_v47, %v2514_v19  ;;  %v3526_v46 = vpop.f32.mrb[73].mxu0 }
0x1098   :  { %v2565_v23 = vpop.f32.mrb[74].mxu0 }
0x1099   :  { %v3527_v24 = vpop.f32.mrb[75].mxu0  ;;  %3549 = vmatmul.mubr.msk.bf16.vlgmr.msra.gmra.mrb[80].mxu0 %vm229_vm6, %v2571_v57 }
0x109a   :  { %3568 = vmatprep.mubr.msk.bf16.mxu0 %vm3839_vm1, %v3838_v15  ;;  %3561 = vmatpush3.bf16.msra.mxu0 %v3629_v7 }
0x109b   :  { %3562 = vmatprep.subr.bf16.mxu0 %v3838_v15 }
0x109e   :  { %3563 = vmatpush3.bf16.msra.mxu0 %v3630_v14 }
0x109f   :  { %3564 = vmatprep.subr.bf16.mxu0 %v3838_v15 }
0x1103   :  { %v2617_v9 = vpop.f32.mrb[84].mxu1 }
0x1104   :  { %v3532_v25 = vpop.f32.mrb[85].mxu1  ;;  %v2765_v56 = vsel %vm76_vm0, %v2617_v9, 0.0 }
0x1105   :  { %v2620_v26 = vpop.f32.mrb[86].mxu1 }
0x1106   :  { %v3533_v28 = vpop.f32.mrb[87].mxu1  ;;  %v2772_v30 = vsel %vm76_vm0, %v2620_v26, 0.0 }
0x1138   :  { %v2664_v29 = vpop.f32.mrb[76].mxu0 }
0x1139   :  { %v2766_v52 = vsel %vm76_vm0, %v2664_v29, 0.0  ;;  %v3538_v60 = vpop.f32.mrb[77].mxu0 }
0x113a   :  { %v2767_v61 = vadd.f32 %v2766_v52, %v2765_v56  ;;  %v2667_v27 = vpop.f32.mrb[78].mxu0  ;;  %v3148_v52 = vld [vmem:[#allocation7 + $0x8] ss:$0 sm:$0xff] }
0x113b   :  { %v2773_v31 = vsel %vm76_vm0, %v2667_v27, 0.0  ;;  %v3539_v63 = vpop.f32.mrb[79].mxu0 }
0x113c   :  { %v2774_v32 = vadd.f32 %v2773_v31, %v2772_v30  ;;  %v3149_v30 = vld [vmem:[#allocation7 + $0x9] ss:$0 sm:$0xff] }
0x1160   :  { %v2711_v33 = vpop.f32.mrb[88].mxu1 }
0x1161   :  { %v2768_v34 = vsel %vm76_vm0, %v2711_v33, 0.0  ;;  %v3544_v35 = vpop.f32.mrb[89].mxu1 }
0x1162   :  { %v2769_v36 = vadd.f32 %v2768_v34, %v2767_v61  ;;  %v2714_v37 = vpop.f32.mrb[90].mxu1  ;;  %v3631_v34 = vld [vmem:[%s4565_s6 + $0x30] sm:$0xff]   ;;  %v3632_v35 = vld [vmem:[%s4565_s6 + $0x38] sm:$0xff]   ;;  %s3845_s6 = smov [#allocation8]  }
0x1163   :  { %v2775_v38 = vsel %vm76_vm0, %v2714_v37, 0.0  ;;  %v3545_v39 = vpop.f32.mrb[91].mxu1  ;;  %3565 = vmatpush3.bf16.msra.mxu0 %v3631_v34  ;;  %s3060_s11 = sshll.u32 %s3845_s6, 4  ;;  %s3061_s11 = int_to_ptr.vmem [resolvable:$true] %s3060_s11 }
0x1164   :  { %v2776_v4 = vadd.f32 %v2775_v38, %v2774_v32  ;;  %3566 = vmatprep.subr.bf16.mxu0 %v3838_v15  ;;  %s3803_s12 = scalar_lea.vmem %s3061_s11, 256  ;;  %p3808_p11 = scmp.lt.s32.totalorder %s3061_s11, %s3061_s11 }
0x1165   :  { %p3804_p10 = scmp.ne.s32.totalorder %s3061_s11, %s3803_s12  ;;  %p3809_p12 = scmp.lt.s32.totalorder %s3803_s12, %s3803_s12 }
0x1167   :  { %3567 = vmatpush3.bf16.msra.mxu0 %v3632_v35  ;;  %p3810_p13 = por %p3809_p12, %p3808_p11 }
0x1169   :  { %p3811_p0 = pnand %p3810_p13, %p3804_p10 }
0x116c   :  { %v2758_v41 = vpop.f32.mrb[80].mxu0 }
0x116d   :  { %v2770_v40 = vsel %vm76_vm0, %v2758_v41, 0.0  ;;  %v3550_v43 = vpop.f32.mrb[81].mxu0 }
0x116e   :  { %v2771_v44 = vadd.f32 %v2770_v40, %v2769_v36  ;;  %v2761_v48 = vpop.f32.mrb[82].mxu0  ;;  %v3154_v36 = vld [vmem:[#allocation5 + $0x1] ss:$0 sm:$0xff] }
0x116f   :  { %v2777_v49 = vsel %vm76_vm0, %v2761_v48, 0.0  ;;  %v3551_v50 = vpop.f32.mrb[83].mxu0  ;;  %v3166_v48 = vld [vmem:[#allocation7 + $0xb] ss:$0 sm:$0xff] }
0x1170   :  { %v2784_v51 = vadd.f32 %v3147_v42, %v2771_v44  ;;  %v2778_v54 = vadd.f32 %v2777_v49, %v2776_v4 }
0x1172   :  { %v2785_v55 = vadd.f32 %v3147_v42, %v2778_v54  ;;  %v4499_v53 = vadd.f32 %v2784_v51, %v4236_v58 }
0x1174   :  { %v2790_v45 = vsel %vm76_vm0, %v4499_v53, 0.0  ;;  %v4504_v62 = vadd.f32 %v2785_v55, %v4239_v10 }
0x1175   :  { %2791 = vadd.xlane.f32.xlu0 %v2790_v45 }
0x1176   :  { %v2793_v2 = vsel %vm76_vm0, %v4504_v62, 0.0 }
0x1177   :  { %2794 = vadd.xlane.f32.xlu1 %v2793_v2 }
0x1202   :  { %v2792_v5 = vpop.xlane.xlu0 %2791 }
0x1203   :  { %v2796_v6 = vmul.f32 0.03125, %v2792_v5 }
0x1204   :  { %v2795_v0 = vpop.xlane.xlu1 %2794 }
0x1205   :  { %v2798_v8 = vsub.f32 %v4499_v53, %v2796_v6  ;;  %v2797_v11 = vmul.f32 0.03125, %v2795_v0 }
0x1207   :  { %v2799_v58 = vsub.f32 %v4504_v62, %v2797_v11  ;;  %v2800_v3 = vmul.f32 %v2798_v8, %v2798_v8 }
0x1209   :  { %v2802_v1 = vsel %vm76_vm0, %v2800_v3, 0.0  ;;  %v2801_v12 = vmul.f32 %v2799_v58, %v2799_v58 }
0x120a   :  { %2803 = vadd.xlane.f32.xlu0 %v2802_v1 }
0x120b   :  { %v2805_v10 = vsel %vm76_vm0, %v2801_v12, 0.0 }
0x120e   :  { %2806 = vadd.xlane.f32.xlu0 %v2805_v10 }
0x1297   :  { %v2804_v16 = vpop.xlane.xlu0 %2803 }
0x1298   :  { %v2808_v17 = vmul.f32 0.032258064, %v2804_v16 }
0x129a   :  { %3721 = vrsqrt.f32 %v2808_v17  ;;  %vm2812_vm1 = vcmp.eq.f32.partialorder %v2808_v17, inf  ;;  %v2815_v22 = vand.u32 2147483648, %v2808_v17  ;;  %vm2814_vm3 = vcmp.eq.f32.partialorder %v2808_v17, 0.0 }
0x129b   :  { %v2807_v18 = vpop.xlane.xlu0 %2806 }
0x129c   :  { %v2809_v19 = vmul.f32 0.032258064, %v2807_v18 }
0x129e   :  { %3723 = vrsqrt.f32 %v2809_v19  ;;  %vm2819_vm4 = vcmp.eq.f32.partialorder %v2809_v19, inf  ;;  %v2822_v9 = vand.u32 2147483648, %v2809_v19  ;;  %vm2821_vm5 = vcmp.eq.f32.partialorder %v2809_v19, 0.0 }
0x12a4   :  { %v3722_v20 = vpop.eup %3721 }
0x12a5   :  { %v2811_v21 = vmul.f32 %v3722_v20, %v2808_v17 }
0x12a7   :  { %v2813_v47 = vsel %vm2812_vm1, %v2808_v17, %v2811_v21 }
0x12a8   :  { %v3724_v57 = vpop.eup %3723  ;;  %v2816_v46 = vsel %vm2814_vm3, %v2815_v22, %v2813_v47 }
0x12a9   :  { %v2824_v23 = vadd.f32 1e-06, %v2816_v46  ;;  %v2818_v24 = vmul.f32 %v3724_v57, %v2809_v19 }
0x12ab   :  { %3725 = vrcp.f32 %v2824_v23  ;;  %v2820_v25 = vsel %vm2819_vm4, %v2809_v19, %v2818_v24 }
0x12ac   :  { %v2823_v26 = vsel %vm2821_vm5, %v2822_v9, %v2820_v25  ;;  %v3172_v25 = vld [vmem:[#allocation7 + $0xc] ss:$0 sm:$0xff] }
0x12ad   :  { %v2825_v28 = vadd.f32 1e-06, %v2823_v26 }
0x12af   :  { %3727 = vrcp.f32 %v2825_v28  ;;  %v3173_v28 = vld [vmem:[#allocation7 + $0xd] ss:$0 sm:$0xff] }
0x12b5   :  { %v3726_v29 = vpop.eup %3725 }
0x12b6   :  { %v2828_v56 = vmul.f32 %v3726_v29, %v2798_v8 }
0x12b8   :  { %v2834_v27 = vmul.f32 %v3148_v52, %v2828_v56 }
0x12b9   :  { %v3728_v60 = vpop.eup %3727 }
0x12ba   :  { %v2829_v61 = vmul.f32 %v3728_v60, %v2799_v58  ;;  %v2840_v63 = vadd.f32 %v3149_v30, %v2834_v27 }
0x12bc   :  { %v2835_v31 = vmul.f32 %v3148_v52, %v2829_v61 }
0x12be   :  { %v2841_v32 = vadd.f32 %v3149_v30, %v2835_v31 }
0x12c0   :  { %v2842_v33 = vpack.c.bf16 %v2841_v32, %v2840_v63 }
0x12c2   :  { %3557 = vmatmul.mubr.msk.bf16.vlgmr.msra.gmra.mrb[92].mxu1 %vm76_vm0, %v2842_v33 }
0x1395   :  { %v2905_v37 = vpop.f32.mrb[92].mxu1 }
0x1396   :  { %v2906_v38 = vadd.f32 %v3154_v36, %v2905_v37  ;;  %v3558_v39 = vpop.f32.mrb[93].mxu1 }
0x1397   :  { %v2908_v4 = vpop.f32.mrb[94].mxu1 }
0x1398   :  { %v2909_v41 = vadd.f32 %v3154_v36, %v2908_v4  ;;  %v3559_v40 = vpop.f32.mrb[95].mxu1  ;;  %v2912_v42 = vmax.f32 %v2906_v38, 0.0 }
0x139a   :  { %v2913_v43 = vmax.f32 %v2909_v41, 0.0 }
0x139c   :  { %v2914_v44 = vpack.c.bf16 %v2913_v43, %v2912_v42 }
0x139e   :  { %3569 = vmatmul.mubr.msk.bf16.vlgmr.msra.gmra.mrb[84].mxu0 %vm1489_vm12, %v2914_v44 }
0x1471   :  { %v2990_v49 = vpop.f32.mrb[84].mxu0 }
0x1472   :  { %v2991_v15 = vadd.f32 %v3166_v48, %v2990_v49  ;;  %v3570_v50 = vpop.f32.mrb[85].mxu0 }
0x1473   :  { %v2993_v51 = vpop.f32.mrb[86].mxu0 }
0x1474   :  { %v2994_v54 = vadd.f32 %v3166_v48, %v2993_v51  ;;  %v3571_v55 = vpop.f32.mrb[87].mxu0  ;;  %v2997_v45 = vadd.f32 %v2991_v15, %v4499_v53 }
0x1476   :  { %v3001_v2 = vsel %vm76_vm0, %v2997_v45, 0.0  ;;  %v2998_v5 = vadd.f32 %v2994_v54, %v4504_v62 }
0x1477   :  { %3002 = vadd.xlane.f32.xlu0 %v3001_v2 }
0x1478   :  { %v3004_v6 = vsel %vm76_vm0, %v2998_v5, 0.0 }
0x1479   :  { %3005 = vadd.xlane.f32.xlu1 %v3004_v6 }
0x1504   :  { %v3003_v0 = vpop.xlane.xlu0 %3002 }
0x1505   :  { %v3007_v8 = vmul.f32 0.03125, %v3003_v0 }
0x1506   :  { %v3006_v11 = vpop.xlane.xlu1 %3005 }
0x1507   :  { %v3009_v58 = vsub.f32 %v2997_v45, %v3007_v8  ;;  %v3008_v3 = vmul.f32 0.03125, %v3006_v11 }
0x1509   :  { %v3010_v1 = vsub.f32 %v2998_v5, %v3008_v3  ;;  %v3011_v12 = vmul.f32 %v3009_v58, %v3009_v58 }
0x150b   :  { %v3013_v10 = vsel %vm76_vm0, %v3011_v12, 0.0  ;;  %v3012_v13 = vmul.f32 %v3010_v1, %v3010_v1 }
0x150c   :  { %3014 = vadd.xlane.f32.xlu0 %v3013_v10 }
0x150d   :  { %v3016_v53 = vsel %vm76_vm0, %v3012_v13, 0.0 }
0x150e   :  { %3017 = vadd.xlane.f32.xlu1 %v3016_v53 }
0x1599   :  { %v3015_v59 = vpop.xlane.xlu0 %3014 }
0x159a   :  { %v3019_v62 = vmul.f32 0.032258064, %v3015_v59 }
0x159b   :  { %v3018_v7 = vpop.xlane.xlu1 %3017 }
0x159c   :  { %3729 = vrsqrt.f32 %v3019_v62  ;;  %v3020_v14 = vmul.f32 0.032258064, %v3018_v7  ;;  %vm3023_vm6 = vcmp.eq.f32.partialorder %v3019_v62, inf  ;;  %v3026_v18 = vand.u32 2147483648, %v3019_v62 }
0x159d   :  { %vm3025_vm7 = vcmp.eq.f32.partialorder %v3019_v62, 0.0 }
0x159e   :  { %3731 = vrsqrt.f32 %v3020_v14  ;;  %vm3030_vm8 = vcmp.eq.f32.partialorder %v3020_v14, inf  ;;  %v3033_v57 = vand.u32 2147483648, %v3020_v14  ;;  %vm3032_vm9 = vcmp.eq.f32.partialorder %v3020_v14, 0.0 }
0x15a6   :  { %v3730_v16 = vpop.eup %3729 }
0x15a7   :  { %v3022_v17 = vmul.f32 %v3730_v16, %v3019_v62 }
0x15a8   :  { %v3732_v19 = vpop.eup %3731 }
0x15a9   :  { %v3024_v20 = vsel %vm3023_vm6, %v3019_v62, %v3022_v17  ;;  %v3029_v22 = vmul.f32 %v3732_v19, %v3020_v14 }
0x15aa   :  { %v3027_v21 = vsel %vm3025_vm7, %v3026_v18, %v3024_v20 }
0x15ab   :  { %v3035_v47 = vadd.f32 1e-06, %v3027_v21  ;;  %v3031_v46 = vsel %vm3030_vm8, %v3020_v14, %v3029_v22 }
0x15ac   :  { %v3034_v23 = vsel %vm3032_vm9, %v3033_v57, %v3031_v46 }
0x15ad   :  { %3733 = vrcp.f32 %v3035_v47  ;;  %v3036_v24 = vadd.f32 1e-06, %v3034_v23 }
0x15af   :  { %3735 = vrcp.f32 %v3036_v24 }
0x15b7   :  { %v3734_v9 = vpop.eup %3733 }
0x15b8   :  { %v3039_v26 = vmul.f32 %v3734_v9, %v3009_v58 }
0x15b9   :  { %v3736_v29 = vpop.eup %3735 }
0x15ba   :  { %v3045_v56 = vmul.f32 %v3172_v25, %v3039_v26  ;;  %v3040_v52 = vmul.f32 %v3736_v29, %v3010_v1 }
0x15bc   :  { %v3051_v60 = vadd.f32 %v3173_v28, %v3045_v56  ;;  %v3046_v61 = vmul.f32 %v3172_v25, %v3040_v52 }
0x15be   :  { %3053 = vst.msk [vmem:[#allocation8] sm:$0xff] %vm76_vm0, %v3051_v60  ;;  %v3052_v27 = vadd.f32 %v3173_v28, %v3046_v61 }
0x15c0   :  { %3054 = vst.msk [vmem:[#allocation8 + $0x8] sm:$0xff] %vm76_vm0, %v3052_v27 }
0x15c1   :  { %3814 = shalt.err (!%p3811_p0)
}
0x15c2   :  { %s3815_s15 = scalar_lea.hbm %s4567_s8, 256 }
0x15c3   :  { %p3816_p1 = scmp.ne.s32.totalorder %s4567_s8, %s3815_s15  ;;  %p3819_p2 = scmp.lt.u32.totalorder %s3815_s15, %s4567_s8 }
0x15c5   :  { %p3821_p3 = pnand %p3819_p2, %p3816_p1 }
0x15c7   :  { %3824 = shalt.err (!%p3821_p3)
}
0x15c8   :  { %3066 = dma.vmem_to_hbm [thread:$0]  %s3061_s11, 256, %s4567_s8, [#allocation4], %s3835_s5, %s3835_s5, %s3836_s28  }
0x15c9   :  { %3829 = dma.done.wait [#allocation4], 256  }
0x15ca   :  { %3830 = vsyncadd [#allocation4], 4294967040 }
0x15cb   :  { %3070 = vsyncpa [#allocation3], 1 }
0x15cc   :  { %3071 = vsyncpa [#allocation6], 1 }
0x15cd   :  { %3072 = vsyncpa [#allocation4], 1 }

</bundles_post_ra>
